<compile_context>
chip_gen: v7x
topology: tpu7x:2x2x1
jax: 0.10.0
libtpu: 0.0.40
codegen_flags: <defaults>
</compile_context>

<pallas_src>
import functools

import jax
import jax.numpy as jnp
from jax.experimental import pallas as pl
from jax.experimental.pallas import tpu as pltpu

# TODO(synk): nn.Dropout is implemented as identity (eval-mode semantics); training-mode
# stochastic masking would use pltpu.prng_seed / pltpu.stateful_bernoulli.

H1, H2, H3 = 250, 500, 10 * 101          # true layer widths
H1P, H2P, H3P = 256, 512, 1024           # lane-padded widths (multiples of 128)
TILE_B = 512                             # max batch tile per grid step


def _round_up(x, m):
    return ((x + m - 1) // m) * m


def _cdiv(a, b):
    return -(-a // b)


_EPI_DTYPE = None


def _epilogue_dtype():
    """bf16 epilogue on chips with a bf16 VPU (v6e/v7x); f32 everywhere else."""
    global _EPI_DTYPE
    if _EPI_DTYPE is None:
        try:
            kind = jax.devices()[0].device_kind.lower()
            _EPI_DTYPE = (jnp.bfloat16 if ("v6" in kind or "v7" in kind)
                          else jnp.float32)
        except Exception:
            _EPI_DTYPE = jnp.float32
    return _EPI_DTYPE


def decoder_kernel(z_ref, w1_ref, b1_ref, w2_ref, b2_ref, w3_ref, b3_ref, o_ref,
                   *, epi_dtype):
    # Layer 1: bf16 operands into the MXU, f32 accumulate; bias+ReLU in epi_dtype.
    h1 = jnp.dot(z_ref[...].astype(jnp.bfloat16), w1_ref[...],
                 preferred_element_type=jnp.float32)
    h1 = jnp.maximum(h1.astype(epi_dtype) + b1_ref[...].astype(epi_dtype),
                     0.0).astype(jnp.bfloat16)
    # dropout1: identity (eval mode)

    # Layer 2
    h2 = jnp.dot(h1, w2_ref[...], preferred_element_type=jnp.float32)
    h2 = jnp.maximum(h2.astype(epi_dtype) + b2_ref[...].astype(epi_dtype),
                     0.0).astype(jnp.bfloat16)
    # dropout2: identity (eval mode)

    # Layer 3: f32 result; drop the padded lanes in-VMEM before the HBM store.
    out = jnp.dot(h2, w3_ref[...], preferred_element_type=jnp.float32) + b3_ref[...]
    o_ref[...] = out[:, :H3]


def prepare_params(w1, b1, w2, b2, w3, b3):
    """One-time padding / dtype conversion of the parameters.

    Weights come in as [in, out] f32 (transposed vs. PyTorch); they are zero-padded
    to lane-dense shapes and cast to bf16. Biases stay f32 (shape [1, out_padded]).
    Call this once at init, NOT per forward pass.
    """
    d_latent = w1.shape[0]
    dlp = _round_up(d_latent, 128)        # lane-dense layer-1 LHS/RHS
    w1p = jnp.zeros((dlp, H1P), jnp.bfloat16).at[:d_latent, :H1].set(
        w1.astype(jnp.bfloat16))
    b1p = jnp.zeros((1, H1P), jnp.float32).at[:, :H1].set(
        b1.astype(jnp.float32)[None, :])
    w2p = jnp.zeros((H1P, H2P), jnp.bfloat16).at[:H1, :H2].set(
        w2.astype(jnp.bfloat16))
    b2p = jnp.zeros((1, H2P), jnp.float32).at[:, :H2].set(
        b2.astype(jnp.float32)[None, :])
    w3p = jnp.zeros((H2P, H3P), jnp.bfloat16).at[:H2, :H3].set(
        w3.astype(jnp.bfloat16))
    b3p = jnp.zeros((1, H3P), jnp.float32).at[:, :H3].set(
        b3.astype(jnp.float32)[None, :])
    return w1p, b1p, w2p, b2p, w3p, b3p


@jax.jit
def decoder_forward(z, w1p, b1p, w2p, b2p, w3p, b3p):
    """z: [B, ...] -> X_reconstructed: [B, 1, 10, 101] (float32).

    Parameters must be the pre-padded bf16/f32 arrays from prepare_params.
    """
    B = z.shape[0]
    z2 = z.reshape(B, -1).astype(jnp.float32)
    d_latent = z2.shape[1]
    dlp = w1p.shape[0]                      # padded latent dim (multiple of 128)

    # Batch tiling: pad to a multiple of 16 (bf16 sublane packing), split evenly
    # into cdiv(bp, TILE_B) tiles (no blow-up for B just over a tile multiple),
    # and force >=2 tiles for bp >= 64 so both v7x TensorCores get work.
    bp = _round_up(max(B, 16), 16)
    n_tiles = _cdiv(bp, TILE_B)
    if n_tiles == 1 and bp >= 64:
        n_tiles = 2
    tb = _round_up(_cdiv(bp, n_tiles), 16)
    bp = n_tiles * tb

    z_pad = jnp.zeros((bp, dlp), jnp.float32).at[:B, :d_latent].set(z2)

    def const(shape):
        # Constant index_map + single buffering: block stays resident in VMEM,
        # no wasted double-buffer space / DMA bookkeeping.
        return pl.BlockSpec(shape, lambda i: (0,) * len(shape),
                            pipeline_mode=pl.Buffered(1))

    kernel = functools.partial(decoder_kernel, epi_dtype=_epilogue_dtype())

    flops = 2 * bp * (dlp * H1P + H1P * H2P + H2P * H3P)
    bytes_accessed = (z_pad.size * 4 + bp * H3 * 4            # activations in/out (f32)
                      + (w1p.size + w2p.size + w3p.size) * 2  # bf16 weights
                      + (b1p.size + b2p.size + b3p.size) * 4)  # f32 biases

    out = pl.pallas_call(
        kernel,
        out_shape=jax.ShapeDtypeStruct((bp, H3), jnp.float32),
        grid=(n_tiles,),
        in_specs=[
            pl.BlockSpec((tb, dlp), lambda i: (i, 0)),   # z: tiled on batch
            const((dlp, H1P)), const((1, H1P)),          # weights/biases: resident
            const((H1P, H2P)), const((1, H2P)),
            const((H2P, H3P)), const((1, H3P)),
        ],
        out_specs=pl.BlockSpec((tb, H3), lambda i: (i, 0)),  # true 1010-wide output
        compiler_params=pltpu.CompilerParams(
            dimension_semantics=("parallel",)),
        cost_estimate=pl.CostEstimate(flops=flops, transcendentals=0,
                                      bytes_accessed=bytes_accessed),
    )(z_pad, w1p, b1p, w2p, b2p, w3p, b3p)

    return out[:B].reshape(B, 1, 10, 101)


def init_params(key, d_latent):
    """Deterministic init matching the module's `initialise=True` branch:
    all weights/biases ~ N(0, 0.001). Weights stored as [in, out], f32."""
    k1, k2, k3, k4, k5, k6 = jax.random.split(key, 6)
    s = 0.001
    w1 = s * jax.random.normal(k1, (d_latent, H1), jnp.float32)
    b1 = s * jax.random.normal(k2, (H1,), jnp.float32)
    w2 = s * jax.random.normal(k3, (H1, H2), jnp.float32)
    b2 = s * jax.random.normal(k4, (H2,), jnp.float32)
    w3 = s * jax.random.normal(k5, (H2, H3), jnp.float32)
    b3 = s * jax.random.normal(k6, (H3,), jnp.float32)
    return w1, b1, w2, b2, w3, b3


if __name__ == "__main__":
    key = jax.random.PRNGKey(0)
    k_param, k_z = jax.random.split(key)

    d_latent = 8
    batch = 2
    raw_params = init_params(k_param, d_latent)
    packed = prepare_params(*raw_params)           # one-time pad + bf16 cast
    z = jax.random.normal(k_z, (batch, d_latent), jnp.float32)

    x_rec = decoder_forward(z, *packed)
    jax.block_until_ready(x_rec)

    assert x_rec.shape == (batch, 1, 10, 101), x_rec.shape
    assert x_rec.dtype == jnp.float32

    # cross-check against a plain-JAX f32 reference of the same math
    # (tolerances loosened vs. a pure-f32 kernel because weights / epilogues
    #  are bf16; with 1e-3-scale weights the resulting error is ~1e-6 on ~1e-3
    #  outputs).
    w1, b1, w2, b2, w3, b3 = raw_params
    zf = z.reshape(batch, -1)
    h = jnp.maximum(zf @ w1 + b1, 0.0)
    h = jnp.maximum(h @ w2 + b2, 0.0)
    ref = (h @ w3 + b3).reshape(-1, 1, 10, 101)
    assert jnp.allclose(x_rec, ref, atol=5e-5, rtol=5e-3), (
        float(jnp.max(jnp.abs(x_rec - ref))))

    print("KERNEL_OK")
</pallas_src>

<mosaic_0001>
module attributes {stable_mosaic.version = 11 : i64} {
  func.func @decoder_kernel(%arg0: i32, %arg1: memref<16x128xf32, #tpu.memory_space<vmem>>, %arg2: memref<128x256xbf16, #tpu.memory_space<vmem>>, %arg3: memref<1x256xf32, #tpu.memory_space<vmem>>, %arg4: memref<256x512xbf16, #tpu.memory_space<vmem>>, %arg5: memref<1x512xf32, #tpu.memory_space<vmem>>, %arg6: memref<512x1024xbf16, #tpu.memory_space<vmem>>, %arg7: memref<1x1024xf32, #tpu.memory_space<vmem>>, %arg8: memref<16x1010xf32, #tpu.memory_space<vmem>>) attributes {dimension_semantics = [#tpu.dimension_semantics<parallel>], iteration_bounds = array<i64: 1>, scalar_prefetch = 0 : i64, scratch_operands = 0 : i64, tpu.core_type = #tpu.core_type<tc>, window_params = [{transform_indices = @transform_0, window_bounds = array<i64: 16, 128>}, {pipeline_mode = #tpu.pipeline_mode<synchronous>, transform_indices = @transform_1, window_bounds = array<i64: 128, 256>}, {pipeline_mode = #tpu.pipeline_mode<synchronous>, transform_indices = @transform_2, window_bounds = array<i64: 1, 256>}, {pipeline_mode = #tpu.pipeline_mode<synchronous>, transform_indices = @transform_3, window_bounds = array<i64: 256, 512>}, {pipeline_mode = #tpu.pipeline_mode<synchronous>, transform_indices = @transform_4, window_bounds = array<i64: 1, 512>}, {pipeline_mode = #tpu.pipeline_mode<synchronous>, transform_indices = @transform_5, window_bounds = array<i64: 512, 1024>}, {pipeline_mode = #tpu.pipeline_mode<synchronous>, transform_indices = @transform_6, window_bounds = array<i64: 1, 1024>}, {transform_indices = @transform_7, window_bounds = array<i64: 16, 1010>}]} {
    %c0 = arith.constant 0 : index
    %c0_0 = arith.constant 0 : index
    %0 = vector.load %arg1[%c0, %c0_0] : memref<16x128xf32, #tpu.memory_space<vmem>>, vector<16x128xf32>
    %1 = arith.truncf %0 : vector<16x128xf32> to vector<16x128xbf16>
    %c0_1 = arith.constant 0 : index
    %c0_2 = arith.constant 0 : index
    %2 = vector.load %arg2[%c0_1, %c0_2] : memref<128x256xbf16, #tpu.memory_space<vmem>>, vector<128x256xbf16>
    %cst = arith.constant dense<0.000000e+00> : vector<16x256xf32>
    %3 = tpu.matmul %1, %2, %cst {dimension_numbers = #tpu.dot_dimension_numbers<[1], [0], [0], [1], [0, 0, 1, 1], [], []>} : vector<16x128xbf16>, vector<128x256xbf16>, vector<16x256xf32> -> vector<16x256xf32>
    %c0_3 = arith.constant 0 : index
    %c0_4 = arith.constant 0 : index
    %4 = vector.load %arg3[%c0_3, %c0_4] : memref<1x256xf32, #tpu.memory_space<vmem>>, vector<1x256xf32>
    %5 = vector.broadcast %4 : vector<1x256xf32> to vector<16x256xf32>
    %6 = arith.addf %3, %5 : vector<16x256xf32>
    %cst_5 = arith.constant 0.000000e+00 : f32
    %7 = vector.broadcast %cst_5 : f32 to vector<16x256xf32>
    %8 = arith.maximumf %6, %7 : vector<16x256xf32>
    %9 = arith.truncf %8 : vector<16x256xf32> to vector<16x256xbf16>
    %c0_6 = arith.constant 0 : index
    %c0_7 = arith.constant 0 : index
    %10 = vector.load %arg4[%c0_6, %c0_7] : memref<256x512xbf16, #tpu.memory_space<vmem>>, vector<256x512xbf16>
    %cst_8 = arith.constant dense<0.000000e+00> : vector<16x512xf32>
    %11 = tpu.matmul %9, %10, %cst_8 {dimension_numbers = #tpu.dot_dimension_numbers<[1], [0], [0], [1], [0, 0, 1, 1], [], []>} : vector<16x256xbf16>, vector<256x512xbf16>, vector<16x512xf32> -> vector<16x512xf32>
    %c0_9 = arith.constant 0 : index
    %c0_10 = arith.constant 0 : index
    %12 = vector.load %arg5[%c0_9, %c0_10] : memref<1x512xf32, #tpu.memory_space<vmem>>, vector<1x512xf32>
    %13 = vector.broadcast %12 : vector<1x512xf32> to vector<16x512xf32>
    %14 = arith.addf %11, %13 : vector<16x512xf32>
    %cst_11 = arith.constant 0.000000e+00 : f32
    %15 = vector.broadcast %cst_11 : f32 to vector<16x512xf32>
    %16 = arith.maximumf %14, %15 : vector<16x512xf32>
    %17 = arith.truncf %16 : vector<16x512xf32> to vector<16x512xbf16>
    %c0_12 = arith.constant 0 : index
    %c0_13 = arith.constant 0 : index
    %18 = vector.load %arg6[%c0_12, %c0_13] : memref<512x1024xbf16, #tpu.memory_space<vmem>>, vector<512x1024xbf16>
    %cst_14 = arith.constant dense<0.000000e+00> : vector<16x1024xf32>
    %19 = tpu.matmul %17, %18, %cst_14 {dimension_numbers = #tpu.dot_dimension_numbers<[1], [0], [0], [1], [0, 0, 1, 1], [], []>} : vector<16x512xbf16>, vector<512x1024xbf16>, vector<16x1024xf32> -> vector<16x1024xf32>
    %c0_15 = arith.constant 0 : index
    %c0_16 = arith.constant 0 : index
    %20 = vector.load %arg7[%c0_15, %c0_16] : memref<1x1024xf32, #tpu.memory_space<vmem>>, vector<1x1024xf32>
    %21 = vector.broadcast %20 : vector<1x1024xf32> to vector<16x1024xf32>
    %22 = arith.addf %19, %21 : vector<16x1024xf32>
    %23 = vector.extract_strided_slice %22 {offsets = [0, 0], sizes = [16, 1010], strides = [1, 1]} : vector<16x1024xf32> to vector<16x1010xf32>
    %c0_17 = arith.constant 0 : index
    %c0_18 = arith.constant 0 : index
    %24 = vector.load %arg8[%c0_17, %c0_18] : memref<16x1010xf32, #tpu.memory_space<vmem>>, vector<16x1010xf32>
    tpu.vector_store %arg8[%c0_17, %c0_18], %23 {strides = array<i32>} : memref<16x1010xf32, #tpu.memory_space<vmem>>, vector<16x1010xf32>,
    return
  }
  func.func @transform_0(%arg0: i32) -> (i32, i32) {
    %c0_i32 = arith.constant 0 : i32
    %c0_i32_0 = arith.constant 0 : i32
    return %arg0, %c0_i32 : i32, i32
  }
  func.func @transform_1(%arg0: i32) -> (i32, i32) {
    %c0_i32 = arith.constant 0 : i32
    %c0_i32_0 = arith.constant 0 : i32
    %c0_i32_1 = arith.constant 0 : i32
    return %c0_i32, %c0_i32_0 : i32, i32
  }
  func.func @transform_2(%arg0: i32) -> (i32, i32) {
    %c0_i32 = arith.constant 0 : i32
    %c0_i32_0 = arith.constant 0 : i32
    %c0_i32_1 = arith.constant 0 : i32
    return %c0_i32, %c0_i32_0 : i32, i32
  }
  func.func @transform_3(%arg0: i32) -> (i32, i32) {
    %c0_i32 = arith.constant 0 : i32
    %c0_i32_0 = arith.constant 0 : i32
    %c0_i32_1 = arith.constant 0 : i32
    return %c0_i32, %c0_i32_0 : i32, i32
  }
  func.func @transform_4(%arg0: i32) -> (i32, i32) {
    %c0_i32 = arith.constant 0 : i32
    %c0_i32_0 = arith.constant 0 : i32
    %c0_i32_1 = arith.constant 0 : i32
    return %c0_i32, %c0_i32_0 : i32, i32
  }
  func.func @transform_5(%arg0: i32) -> (i32, i32) {
    %c0_i32 = arith.constant 0 : i32
    %c0_i32_0 = arith.constant 0 : i32
    %c0_i32_1 = arith.constant 0 : i32
    return %c0_i32, %c0_i32_0 : i32, i32
  }
  func.func @transform_6(%arg0: i32) -> (i32, i32) {
    %c0_i32 = arith.constant 0 : i32
    %c0_i32_0 = arith.constant 0 : i32
    %c0_i32_1 = arith.constant 0 : i32
    return %c0_i32, %c0_i32_0 : i32, i32
  }
  func.func @transform_7(%arg0: i32) -> (i32, i32) {
    %c0_i32 = arith.constant 0 : i32
    %c0_i32_0 = arith.constant 0 : i32
    return %arg0, %c0_i32 : i32, i32
  }
}

</mosaic_0001>

<bundles_post_ra>
// kernel: decoder_forward.1
= control target key start
LH: loop header
LB: loop body
LE: loop exit
PB: predicated region body
PF: predicated region fallthrough
CT: control target
= control target key end

     0   :  { %12 = vsyncpa [#allocation3], 0  ;;  %s3448_s0 = inlined_call_operand.vmem [shape: f32[16,128], index: 0, kind: input, shape index: {}]   ;;  %s3449_s1 = inlined_call_operand.hbm [shape: bf16[128,256], index: 1, kind: input, shape index: {}]   ;;  %s3450_s2 = inlined_call_operand.vmem [shape: f32[1,256], index: 2, kind: input, shape index: {}]   ;;  %s3451_s3 = inlined_call_operand.hbm [shape: bf16[256,512], index: 3, kind: input, shape index: {}]   ;;  %s3452_s4 = inlined_call_operand.vmem [shape: f32[1,512], index: 4, kind: input, shape index: {}]   ;;  %s3453_s5 = inlined_call_operand.hbm [shape: bf16[512,1024], index: 5, kind: input, shape index: {}]   ;;  %s3454_s6 = inlined_call_operand.vmem [shape: f32[1,1024], index: 6, kind: input, shape index: {}]   ;;  %s3455_s7 = inlined_call_operand.vmem [shape: f32[16,1010], index: 7, kind: output, shape index: {}]  }
   0x1   :  { %13 = vsyncpa [#allocation5], 0  ;;  %s3245_s24 = smov [#allocation4]   ;;  %s3175_s28 = scalar_lea.hbm %s3451_s3, 8192 }
   0x2   :  { %s35_s25 = sshll.u32 %s3245_s24, 4  ;;  %p3176_p0 = scmp.ne.s32.totalorder %s3451_s3, %s3175_s28  ;;  %s36_s25 = int_to_ptr.vmem [resolvable:$true] %s35_s25 }
   0x3   :  { %p3179_p1 = scmp.lt.u32.totalorder %s3175_s28, %s3451_s3 }
   0x5   :  { %p3181_p2 = pnand %p3179_p1, %p3176_p0 }
   0x7   :  { %3184 = shalt.err (!%p3181_p2)
}
   0x8   :  { %s3185_s10 = scalar_lea.vmem %s36_s25, 8192  ;;  %p3190_p4 = scmp.lt.s32.totalorder %s36_s25, %s36_s25 }
   0x9   :  { %p3186_p3 = scmp.ne.s32.totalorder %s36_s25, %s3185_s10  ;;  %p3191_p5 = scmp.lt.s32.totalorder %s3185_s10, %s3185_s10 }
   0xb   :  { %p3192_p6 = por %p3191_p5, %p3190_p4 }
   0xd   :  { %p3193_p7 = pnand %p3192_p6, %p3186_p3 }
   0xf   :  { %3196 = shalt.err (!%p3193_p7)
}
  0x10   :  { %s3246_s11 = smov 256   ;;  %s3247_s12 = smov 16  }
  0x11   :  { %41 = dma.hbm_to_vmem [thread:$0]  %s3451_s3, 8192, %s36_s25, [#allocation5], %s3246_s11, %s3246_s11, %s3247_s12  }
  0x12   :  { %s3248_s15 = smov [#allocation2]   ;;  %s3197_s19 = scalar_lea.hbm %s3449_s1, 2048 }
  0x13   :  { %s21_s16 = sshll.u32 %s3248_s15, 4  ;;  %p3198_p8 = scmp.ne.s32.totalorder %s3449_s1, %s3197_s19  ;;  %s22_s16 = int_to_ptr.vmem [resolvable:$true] %s21_s16 }
  0x14   :  { %p3201_p9 = scmp.lt.u32.totalorder %s3197_s19, %s3449_s1 }
  0x16   :  { %p3203_p10 = pnand %p3201_p9, %p3198_p8 }
  0x18   :  { %3206 = shalt.err (!%p3203_p10)
}
  0x19   :  { %s3207_s24 = scalar_lea.vmem %s22_s16, 2048  ;;  %p3212_p12 = scmp.lt.s32.totalorder %s22_s16, %s22_s16 }
  0x1a   :  { %p3208_p11 = scmp.ne.s32.totalorder %s22_s16, %s3207_s24  ;;  %p3213_p13 = scmp.lt.s32.totalorder %s3207_s24, %s3207_s24 }
  0x1c   :  { %p3214_p0 = por %p3213_p13, %p3212_p12 }
  0x1e   :  { %p3215_p1 = pnand %p3214_p0, %p3208_p11 }
  0x20   :  { %3218 = shalt.err (!%p3215_p1)
}
  0x21   :  { %s3249_s3 = smov 128   ;;  %s3250_s25 = smov 8  }
  0x22   :  { %27 = dma.hbm_to_vmem [thread:$0]  %s3449_s1, 2048, %s22_s16, [#allocation3], %s3249_s3, %s3249_s3, %s3250_s25  }
  0x23   :  { %s3251_s28 = smov [#allocation6]   ;;  %s3219_s9 = scalar_lea.hbm %s3453_s5, 32768 }
  0x24   :  { %s49_s29 = sshll.u32 %s3251_s28, 4  ;;  %p3220_p2 = scmp.ne.s32.totalorder %s3453_s5, %s3219_s9  ;;  %s50_s29 = int_to_ptr.vmem [resolvable:$true] %s49_s29 }
  0x25   :  { %p3223_p3 = scmp.lt.u32.totalorder %s3219_s9, %s3453_s5 }
  0x27   :  { %p3225_p4 = pnand %p3223_p3, %p3220_p2 }
  0x29   :  { %3228 = shalt.err (!%p3225_p4)
}
  0x2a   :  { %s3229_s14 = scalar_lea.vmem %s50_s29, 32768  ;;  %p3234_p6 = scmp.lt.s32.totalorder %s50_s29, %s50_s29 }
  0x2b   :  { %p3230_p5 = scmp.ne.s32.totalorder %s50_s29, %s3229_s14  ;;  %p3235_p7 = scmp.lt.s32.totalorder %s3229_s14, %s3229_s14 }
  0x2d   :  { %p3236_p8 = por %p3235_p7, %p3234_p6 }
  0x2f   :  { %p3237_p9 = pnand %p3236_p8, %p3230_p5 }
  0x31   :  { %3240 = shalt.err (!%p3237_p9)
}
  0x32   :  { %s3252_s1 = smov 512   ;;  %s3253_s15 = smov 32  }
  0x33   :  { %55 = dma.hbm_to_vmem [thread:$0]  %s3453_s5, 32768, %s50_s29, [#allocation5], %s3252_s1, %s3252_s1, %s3253_s15  }
  0x34   :  { %3241 = dma.done.wait [#allocation3], 2048  }
  0x35   :  { %3242 = vsyncadd [#allocation3], 4294965248 }
  0x36   :  { %3243 = dma.done.wait [#allocation5], 40960  }
  0x37   :  { %3244 = vsyncadd [#allocation5], 4294926336  ;;  %v3254_v0 = vmov 0   ;;  %v3055_v1 = vld [vmem:[#allocation2 + $0x4] ss:$8 sps:$4 sm:$0xff]   ;;  %vm2661_vm0 = vcmask 932864  }
  0x38   :  { %211 = vmatprep.mubr.bf16.mxu0 %v3254_v0  ;;  %v3057_v2 = vld [vmem:[#allocation2] ss:$8 sps:$4 sm:$0xff]   ;;  %179 = vmatprep.subr.bf16.mxu0 %v3055_v1  ;;  %v3058_v3 = vld [vmem:[#allocation2 + $0x14] ss:$8 sps:$4 sm:$0xff]   ;;  %v3060_v4 = vld [vmem:[#allocation2 + $0x10] ss:$8 sps:$4 sm:$0xff]  }
  0x39   :  { %180 = vmatpush1.bf16.msra.mxu0 %v3057_v2  ;;  %v3061_v5 = vld [vmem:[#allocation2 + $0x24] ss:$8 sps:$4 sm:$0xff]   ;;  %v3063_v6 = vld [vmem:[#allocation2 + $0x20] ss:$8 sps:$4 sm:$0xff]   ;;  %v3064_v7 = vld [vmem:[#allocation2 + $0x34] ss:$8 sps:$4 sm:$0xff]  }
  0x3a   :  { %181 = vmatprep.subr.bf16.mxu0 %v3058_v3  ;;  %v3066_v8 = vld [vmem:[#allocation2 + $0x30] ss:$8 sps:$4 sm:$0xff]   ;;  %v3067_v9 = vld [vmem:[#allocation2 + $0x44] ss:$8 sps:$4 sm:$0xff]   ;;  %v3069_v13 = vld [vmem:[#allocation2 + $0x40] ss:$8 sps:$4 sm:$0xff]  }
  0x3b   :  { %v3079_v10 = vld [vmem:[#allocation4 + $0x4] ss:$16 sps:$4 sm:$0xff]   ;;  %v3084_v11 = vld [vmem:[#allocation4] ss:$16 sps:$4 sm:$0xff]   ;;  %v69_v27 = vld [vmem:[%s3448_s0 + $0x8] sm:$0xff] }
  0x3c   :  { %634 = vmatprep.subr.bf16.mxu1 %v3079_v10  ;;  %v3085_v12 = vld [vmem:[#allocation4 + $0x24] ss:$16 sps:$4 sm:$0xff]   ;;  %v3090_v15 = vld [vmem:[#allocation4 + $0x20] ss:$16 sps:$4 sm:$0xff]   ;;  %v3083_v28 = vld [vmem:[#allocation4 + $0xc] ss:$16 sps:$4 sm:$0xff]  }
  0x3d   :  { %182 = vmatpush1.bf16.msra.mxu0 %v3060_v4  ;;  %635 = vmatpush1.bf16.msra.mxu1 %v3084_v11  ;;  %v3070_v14 = vld [vmem:[#allocation2 + $0x54] ss:$8 sps:$4 sm:$0xff]   ;;  %v3072_v17 = vld [vmem:[#allocation2 + $0x50] ss:$8 sps:$4 sm:$0xff]   ;;  %v3073_v18 = vld [vmem:[#allocation2 + $0x64] ss:$8 sps:$4 sm:$0xff]  }
  0x3e   :  { %183 = vmatprep.subr.bf16.mxu0 %v3061_v5  ;;  %636 = vmatprep.subr.bf16.mxu1 %v3085_v12  ;;  %v3091_v16 = vld [vmem:[#allocation4 + $0x44] ss:$16 sps:$4 sm:$0xff]   ;;  %v3096_v19 = vld [vmem:[#allocation4 + $0x40] ss:$16 sps:$4 sm:$0xff]   ;;  %v3081_v32 = vld [vmem:[#allocation4 + $0x8] ss:$16 sps:$4 sm:$0xff]  }
  0x3f   :  { %v3097_v20 = vld [vmem:[#allocation4 + $0x64] ss:$16 sps:$4 sm:$0xff]   ;;  %v3075_v21 = vld [vmem:[#allocation2 + $0x60] ss:$8 sps:$4 sm:$0xff]   ;;  %v3078_v25 = vld [vmem:[#allocation2 + $0x70] ss:$8 sps:$4 sm:$0xff]  }
  0x40   :  { %v3102_v22 = vld [vmem:[#allocation4 + $0x60] ss:$16 sps:$4 sm:$0xff]   ;;  %v3076_v23 = vld [vmem:[#allocation2 + $0x74] ss:$8 sps:$4 sm:$0xff]   ;;  %v3087_v36 = vld [vmem:[#allocation4 + $0x28] ss:$16 sps:$4 sm:$0xff]  }
  0x41   :  { %184 = vmatpush1.bf16.msra.mxu0 %v3063_v6  ;;  %637 = vmatpush1.bf16.msra.mxu1 %v3090_v15  ;;  %v3103_v24 = vld [vmem:[#allocation4 + $0x84] ss:$16 sps:$4 sm:$0xff]   ;;  %v3108_v29 = vld [vmem:[#allocation4 + $0x80] ss:$16 sps:$4 sm:$0xff]   ;;  %v3089_v34 = vld [vmem:[#allocation4 + $0x2c] ss:$16 sps:$4 sm:$0xff]  }
  0x42   :  { %185 = vmatprep.subr.bf16.mxu0 %v3064_v7  ;;  %638 = vmatprep.subr.bf16.mxu1 %v3091_v16  ;;  %v68_v26 = vld [vmem:[%s3448_s0] sm:$0xff]  ;;  %v3095_v37 = vld [vmem:[#allocation4 + $0x4c] ss:$16 sps:$4 sm:$0xff]   ;;  %v3093_v40 = vld [vmem:[#allocation4 + $0x48] ss:$16 sps:$4 sm:$0xff]  }
  0x43   :  { %v3109_v30 = vld [vmem:[#allocation4 + $0xa4] ss:$16 sps:$4 sm:$0xff]   ;;  %v70_v31 = vpack.c.bf16 %v69_v27, %v68_v26  ;;  %v3114_v33 = vld [vmem:[#allocation4 + $0xa0] ss:$16 sps:$4 sm:$0xff]   ;;  %v3101_v42 = vld [vmem:[#allocation4 + $0x6c] ss:$16 sps:$4 sm:$0xff]  }
  0x44   :  { %v3115_v35 = vld [vmem:[#allocation4 + $0xc4] ss:$16 sps:$4 sm:$0xff]   ;;  %v3120_v38 = vld [vmem:[#allocation4 + $0xc0] ss:$16 sps:$4 sm:$0xff]   ;;  %v3099_v44 = vld [vmem:[#allocation4 + $0x68] ss:$16 sps:$4 sm:$0xff]  }
  0x45   :  { %186 = vmatpush1.bf16.msra.mxu0 %v3066_v8  ;;  %639 = vmatpush1.bf16.msra.mxu1 %v3096_v19  ;;  %v3121_v39 = vld [vmem:[#allocation4 + $0xe4] ss:$16 sps:$4 sm:$0xff]   ;;  %v3126_v41 = vld [vmem:[#allocation4 + $0xe0] ss:$16 sps:$4 sm:$0xff]   ;;  %v3107_v45 = vld [vmem:[#allocation4 + $0x8c] ss:$16 sps:$4 sm:$0xff]  }
  0x46   :  { %187 = vmatprep.subr.bf16.mxu0 %v3067_v9  ;;  %640 = vmatprep.subr.bf16.mxu1 %v3097_v20  ;;  %v3127_v43 = vld [vmem:[#allocation4 + $0x104] ss:$16 sps:$4 sm:$0xff]   ;;  %v3132_v46 = vld [vmem:[#allocation4 + $0x100] ss:$16 sps:$4 sm:$0xff]   ;;  %v3105_v48 = vld [vmem:[#allocation4 + $0x88] ss:$16 sps:$4 sm:$0xff]  }
  0x47   :  { %v3133_v47 = vld [vmem:[#allocation4 + $0x124] ss:$16 sps:$4 sm:$0xff]   ;;  %v3138_v49 = vld [vmem:[#allocation4 + $0x120] ss:$16 sps:$4 sm:$0xff]   ;;  %v3113_v50 = vld [vmem:[#allocation4 + $0xac] ss:$16 sps:$4 sm:$0xff]  }
  0x48   :  { %v3139_v51 = vld [vmem:[#allocation4 + $0x144] ss:$16 sps:$4 sm:$0xff]   ;;  %v3111_v52 = vld [vmem:[#allocation4 + $0xa8] ss:$16 sps:$4 sm:$0xff]   ;;  %v3144_v53 = vld [vmem:[#allocation4 + $0x140] ss:$16 sps:$4 sm:$0xff]  }
  0x49   :  { %188 = vmatpush1.bf16.msra.mxu0 %v3069_v13  ;;  %641 = vmatpush1.bf16.msra.mxu1 %v3102_v22  ;;  %v3119_v54 = vld [vmem:[#allocation4 + $0xcc] ss:$16 sps:$4 sm:$0xff]   ;;  %v3145_v55 = vld [vmem:[#allocation4 + $0x164] ss:$16 sps:$4 sm:$0xff]   ;;  %v3117_v56 = vld [vmem:[#allocation4 + $0xc8] ss:$16 sps:$4 sm:$0xff]  }
  0x4a   :  { %189 = vmatprep.subr.bf16.mxu0 %v3070_v14  ;;  %642 = vmatprep.subr.bf16.mxu1 %v3103_v24  ;;  %v3150_v57 = vld [vmem:[#allocation4 + $0x160] ss:$16 sps:$4 sm:$0xff]   ;;  %v3125_v58 = vld [vmem:[#allocation4 + $0xec] ss:$16 sps:$4 sm:$0xff]   ;;  %v3151_v59 = vld [vmem:[#allocation4 + $0x184] ss:$16 sps:$4 sm:$0xff]  }
  0x4b   :  { %v3123_v60 = vld [vmem:[#allocation4 + $0xe8] ss:$16 sps:$4 sm:$0xff]   ;;  %v3156_v61 = vld [vmem:[#allocation4 + $0x180] ss:$16 sps:$4 sm:$0xff]   ;;  %v3131_v62 = vld [vmem:[#allocation4 + $0x10c] ss:$16 sps:$4 sm:$0xff]  }
  0x4c   :  { %v3157_v63 = vld [vmem:[#allocation4 + $0x1a4] ss:$16 sps:$4 sm:$0xff]   ;;  %v3129_v0 = vld [vmem:[#allocation4 + $0x108] ss:$16 sps:$4 sm:$0xff]   ;;  %v3137_v1 = vld [vmem:[#allocation4 + $0x12c] ss:$16 sps:$4 sm:$0xff]  }
  0x4d   :  { %190 = vmatpush1.bf16.msra.mxu0 %v3072_v17  ;;  %643 = vmatpush1.bf16.msra.mxu1 %v3108_v29  ;;  %v3135_v2 = vld [vmem:[#allocation4 + $0x128] ss:$16 sps:$4 sm:$0xff]   ;;  %v3143_v3 = vld [vmem:[#allocation4 + $0x14c] ss:$16 sps:$4 sm:$0xff]   ;;  %v3162_v11 = vld [vmem:[#allocation4 + $0x1a0] ss:$16 sps:$4 sm:$0xff]  }
  0x4e   :  { %191 = vmatprep.subr.bf16.mxu0 %v3073_v18  ;;  %644 = vmatprep.subr.bf16.mxu1 %v3109_v30  ;;  %v3141_v4 = vld [vmem:[#allocation4 + $0x148] ss:$16 sps:$4 sm:$0xff]   ;;  %v3149_v5 = vld [vmem:[#allocation4 + $0x16c] ss:$16 sps:$4 sm:$0xff]   ;;  %v3163_v12 = vld [vmem:[#allocation4 + $0x1c4] ss:$16 sps:$4 sm:$0xff]  }
  0x4f   :  { %v3147_v6 = vld [vmem:[#allocation4 + $0x168] ss:$16 sps:$4 sm:$0xff]   ;;  %v3155_v7 = vld [vmem:[#allocation4 + $0x18c] ss:$16 sps:$4 sm:$0xff]   ;;  %v3168_v15 = vld [vmem:[#allocation4 + $0x1c0] ss:$16 sps:$4 sm:$0xff]  }
  0x50   :  { %v3153_v8 = vld [vmem:[#allocation4 + $0x188] ss:$16 sps:$4 sm:$0xff]   ;;  %v3161_v9 = vld [vmem:[#allocation4 + $0x1ac] ss:$16 sps:$4 sm:$0xff]   ;;  %v3169_v16 = vld [vmem:[#allocation4 + $0x1e4] ss:$16 sps:$4 sm:$0xff]  }
  0x51   :  { %192 = vmatpush1.bf16.msra.mxu0 %v3075_v21  ;;  %645 = vmatpush1.bf16.msra.mxu1 %v3114_v33  ;;  %v3159_v10 = vld [vmem:[#allocation4 + $0x1a8] ss:$16 sps:$4 sm:$0xff]   ;;  %v3167_v13 = vld [vmem:[#allocation4 + $0x1cc] ss:$16 sps:$4 sm:$0xff]   ;;  %v3174_v19 = vld [vmem:[#allocation4 + $0x1e0] ss:$16 sps:$4 sm:$0xff]  }
  0x52   :  { %193 = vmatprep.subr.bf16.mxu0 %v3076_v23  ;;  %646 = vmatprep.subr.bf16.mxu1 %v3115_v35  ;;  %v3165_v14 = vld [vmem:[#allocation4 + $0x1c8] ss:$16 sps:$4 sm:$0xff]   ;;  %v3173_v17 = vld [vmem:[#allocation4 + $0x1ec] ss:$16 sps:$4 sm:$0xff]   ;;  %v732_v20 = vld [vmem:[#allocation6] sm:$0xff] }
  0x53   :  { %v3171_v18 = vld [vmem:[#allocation4 + $0x1e8] ss:$16 sps:$4 sm:$0xff]   ;;  %v736_v21 = vld [vmem:[#allocation6 + $0x20] sm:$0xff] }
  0x54   :  { %v733_v22 = vld [vmem:[#allocation6 + $0x8] sm:$0xff]  ;;  %v2757_v23 = vcombine.low %v732_v20, %v736_v21  ;;  %v2758_v24 = vcombine.high %v732_v20, %v736_v21 }
  0x55   :  { %194 = vmatpush1.bf16.msra.mxu0 %v3078_v25  ;;  %647 = vmatpush1.bf16.msra.mxu1 %v3120_v38  ;;  %v737_v25 = vld [vmem:[#allocation6 + $0x28] sm:$0xff] }
  0x56   :  { %677 = vmatprep.subr.bf16.mxu0 %v3083_v28  ;;  %648 = vmatprep.subr.bf16.mxu1 %v3121_v39  ;;  %v2759_v26 = vcombine.low %v733_v22, %v737_v25  ;;  %v2760_v27 = vcombine.high %v733_v22, %v737_v25  ;;  %v89_v28 = vlaneseq  ;;  %v781_v25 = vld [vmem:[#allocation6 + $0x188] sm:$0xff] }
  0x58   :  { %212 = vmatmul.mubr.bf16.vlgmr.msra.gmra.mrb[0].mxu0 %v70_v31  ;;  %v3337_v29 = vshrl.u32 %v89_v28, 7  ;;  %v87_v31 = vld [vmem:[%s3450_s2] sm:$0x3] }
  0x59   :  { %678 = vmatpush1.bf16.msra.mxu0 %v3081_v32  ;;  %649 = vmatpush1.bf16.msra.mxu1 %v3126_v41 }
  0x5a   :  { %679 = vmatprep.subr.bf16.mxu0 %v3089_v34  ;;  %650 = vmatprep.subr.bf16.mxu1 %v3127_v43  ;;  %v3340_v30 = vsub.s32 0, %v3337_v29  ;;  %v3346_v32 = vsub.s32 1, %v3337_v29 }
  0x5c   :  { %v92_v33 = vrot.slane %v87_v31, %v3340_v30  ;;  %v96_v34 = vrot.slane %v87_v31, %v3346_v32 }
  0x5d   :  { %680 = vmatpush1.bf16.msra.mxu0 %v3087_v36  ;;  %651 = vmatpush1.bf16.msra.mxu1 %v3132_v46 }
  0x5e   :  { %681 = vmatprep.subr.bf16.mxu0 %v3095_v37  ;;  %652 = vmatprep.subr.bf16.mxu1 %v3133_v47 }
  0x61   :  { %682 = vmatpush1.bf16.msra.mxu0 %v3093_v40  ;;  %653 = vmatpush1.bf16.msra.mxu1 %v3138_v49  ;;  %v741_v49 = vld [vmem:[#allocation6 + $0x48] sm:$0xff] }
  0x62   :  { %683 = vmatprep.subr.bf16.mxu0 %v3101_v42  ;;  %654 = vmatprep.subr.bf16.mxu1 %v3139_v51 }
  0x65   :  { %684 = vmatpush1.bf16.msra.mxu0 %v3099_v44  ;;  %655 = vmatpush1.bf16.msra.mxu1 %v3144_v53 }
  0x66   :  { %685 = vmatprep.subr.bf16.mxu0 %v3107_v45  ;;  %656 = vmatprep.subr.bf16.mxu1 %v3145_v55  ;;  %v740_v45 = vld [vmem:[#allocation6 + $0x40] sm:$0xff] }
  0x67   :  { %v748_v55 = vld [vmem:[#allocation6 + $0x80] sm:$0xff] }
  0x69   :  { %686 = vmatpush1.bf16.msra.mxu0 %v3105_v48  ;;  %657 = vmatpush1.bf16.msra.mxu1 %v3150_v57  ;;  %v744_v48 = vld [vmem:[#allocation6 + $0x60] sm:$0xff]  ;;  %v749_v57 = vld [vmem:[#allocation6 + $0x88] sm:$0xff] }
  0x6a   :  { %687 = vmatprep.subr.bf16.mxu0 %v3113_v50  ;;  %658 = vmatprep.subr.bf16.mxu1 %v3151_v59  ;;  %v745_v50 = vld [vmem:[#allocation6 + $0x68] sm:$0xff]  ;;  %v2766_v53 = vcombine.high %v740_v45, %v744_v48  ;;  %v2765_v59 = vcombine.low %v740_v45, %v744_v48 }
  0x6b   :  { %v801_v45 = vld [vmem:[#allocation6 + $0x228] sm:$0xff] }
  0x6d   :  { %688 = vmatpush1.bf16.msra.mxu0 %v3111_v52  ;;  %659 = vmatpush1.bf16.msra.mxu1 %v3156_v61 }
  0x6e   :  { %689 = vmatprep.subr.bf16.mxu0 %v3119_v54  ;;  %660 = vmatprep.subr.bf16.mxu1 %v3157_v63  ;;  %v2768_v54 = vcombine.high %v741_v49, %v745_v50  ;;  %v756_v63 = vld [vmem:[#allocation6 + $0xc0] sm:$0xff] }
  0x71   :  { %690 = vmatpush1.bf16.msra.mxu0 %v3117_v56  ;;  %661 = vmatpush1.bf16.msra.mxu1 %v3162_v11  ;;  %v752_v56 = vld [vmem:[#allocation6 + $0xa0] sm:$0xff] }
  0x72   :  { %691 = vmatprep.subr.bf16.mxu0 %v3125_v58  ;;  %662 = vmatprep.subr.bf16.mxu1 %v3163_v12  ;;  %v753_v58 = vld [vmem:[#allocation6 + $0xa8] sm:$0xff]  ;;  %v2774_v61 = vcombine.high %v748_v55, %v752_v56 }
  0x75   :  { %692 = vmatpush1.bf16.msra.mxu0 %v3123_v60  ;;  %663 = vmatpush1.bf16.msra.mxu1 %v3168_v15  ;;  %v2767_v60 = vcombine.low %v741_v49, %v745_v50  ;;  %v772_v15 = vld [vmem:[#allocation6 + $0x140] sm:$0xff] }
  0x76   :  { %693 = vmatprep.subr.bf16.mxu0 %v3131_v62  ;;  %664 = vmatprep.subr.bf16.mxu1 %v3169_v16  ;;  %v2776_v62 = vcombine.high %v749_v57, %v753_v58  ;;  %v776_v16 = vld [vmem:[#allocation6 + $0x160] sm:$0xff] }
  0x77   :  { %v2798_v21 = vcombine.high %v772_v15, %v776_v16  ;;  %v804_v50 = vld [vmem:[#allocation6 + $0x240] sm:$0xff] }
  0x79   :  { %694 = vmatpush1.bf16.msra.mxu0 %v3129_v0  ;;  %665 = vmatpush1.bf16.msra.mxu1 %v3174_v19  ;;  %v760_v0 = vld [vmem:[#allocation6 + $0xe0] sm:$0xff] }
  0x7a   :  { %695 = vmatprep.subr.bf16.mxu0 %v3137_v1  ;;  %2310 = vmatprep.subr.bf16.mxu1 %v2758_v24  ;;  %v757_v1 = vld [vmem:[#allocation6 + $0xc8] sm:$0xff]  ;;  %v2781_v11 = vcombine.low %v756_v63, %v760_v0  ;;  %v784_v24 = vld [vmem:[#allocation6 + $0x1a0] sm:$0xff] }
  0x7d   :  { %696 = vmatpush1.bf16.msra.mxu0 %v3135_v2  ;;  %v761_v2 = vld [vmem:[#allocation6 + $0xe8] sm:$0xff] }
  0x7e   :  { %697 = vmatprep.subr.bf16.mxu0 %v3143_v3  ;;  %v2773_v3 = vcombine.low %v748_v55, %v752_v56  ;;  %v2783_v12 = vcombine.low %v757_v1, %v761_v2 }
  0x81   :  { %698 = vmatpush1.bf16.msra.mxu0 %v3141_v4  ;;  %v2775_v4 = vcombine.low %v749_v57, %v753_v58  ;;  %v812_v58 = vld [vmem:[#allocation6 + $0x280] sm:$0xff] }
  0x82   :  { %699 = vmatprep.subr.bf16.mxu0 %v3149_v5  ;;  %v2782_v5 = vcombine.high %v756_v63, %v760_v0 }
  0x85   :  { %700 = vmatpush1.bf16.msra.mxu0 %v3147_v6  ;;  %v2784_v6 = vcombine.high %v757_v1, %v761_v2  ;;  %v820_v2 = vld [vmem:[#allocation6 + $0x2c0] sm:$0xff] }
  0x86   :  { %701 = vmatprep.subr.bf16.mxu0 %v3155_v7  ;;  %v764_v7 = vld [vmem:[#allocation6 + $0x100] sm:$0xff] }
  0x89   :  { %702 = vmatpush1.bf16.msra.mxu0 %v3153_v8  ;;  %v768_v8 = vld [vmem:[#allocation6 + $0x120] sm:$0xff] }
  0x8a   :  { %703 = vmatprep.subr.bf16.mxu0 %v3161_v9  ;;  %v765_v9 = vld [vmem:[#allocation6 + $0x108] sm:$0xff]  ;;  %v2789_v19 = vcombine.low %v764_v7, %v768_v8 }
  0x8d   :  { %704 = vmatpush1.bf16.msra.mxu0 %v3159_v10  ;;  %v769_v10 = vld [vmem:[#allocation6 + $0x128] sm:$0xff] }
  0x8e   :  { %705 = vmatprep.subr.bf16.mxu0 %v3167_v13  ;;  %v2790_v13 = vcombine.high %v764_v7, %v768_v8  ;;  %v2791_v20 = vcombine.low %v765_v9, %v769_v10 }
  0x91   :  { %706 = vmatpush1.bf16.msra.mxu0 %v3165_v14  ;;  %v2792_v14 = vcombine.high %v765_v9, %v769_v10  ;;  %v828_v10 = vld [vmem:[#allocation6 + $0x300] sm:$0xff] }
  0x92   :  { %707 = vmatprep.subr.bf16.mxu0 %v3173_v17  ;;  %v773_v17 = vld [vmem:[#allocation6 + $0x148] sm:$0xff] }
  0x95   :  { %708 = vmatpush1.bf16.msra.mxu0 %v3171_v18  ;;  %v777_v18 = vld [vmem:[#allocation6 + $0x168] sm:$0xff] }
  0x96   :  { %2396 = vmatprep.subr.bf16.mxu0 %v2760_v27  ;;  %v2800_v22 = vcombine.high %v773_v17, %v777_v18  ;;  %v2797_v27 = vcombine.low %v772_v15, %v776_v16  ;;  %v2799_v28 = vcombine.low %v773_v17, %v777_v18  ;;  %v836_v18 = vld [vmem:[#allocation6 + $0x340] sm:$0xff] }
 0x12b   :  { %v213_v35 = vpop.f32.mrb[0].mxu0 }
 0x12c   :  { %v214_v36 = vadd.f32 %v213_v35, %v92_v33  ;;  %v215_v37 = vpop.f32.mrb[1].mxu0  ;;  %v792_v35 = vld [vmem:[#allocation6 + $0x1e0] sm:$0xff] }
 0x12d   :  { %v216_v38 = vadd.f32 %v215_v37, %v96_v34  ;;  %v217_v39 = vpop.f32.mrb[2].mxu0  ;;  %v793_v37 = vld [vmem:[#allocation6 + $0x1e8] sm:$0xff] }
 0x12e   :  { %v218_v40 = vadd.f32 %v217_v39, %v92_v33  ;;  %v219_v41 = vpop.f32.mrb[3].mxu0  ;;  %v222_v43 = vmax.f32 %v214_v36, 0.0  ;;  %v789_v36 = vld [vmem:[#allocation6 + $0x1c8] sm:$0xff] }
 0x12f   :  { %v220_v42 = vadd.f32 %v219_v41, %v96_v34  ;;  %v223_v46 = vmax.f32 %v216_v38, 0.0  ;;  %v788_v34 = vld [vmem:[#allocation6 + $0x1c0] sm:$0xff]  ;;  %v2816_v41 = vcombine.high %v789_v36, %v793_v37 }
 0x130   :  { %v224_v44 = vmax.f32 %v218_v40, 0.0  ;;  %v2814_v40 = vcombine.high %v788_v34, %v792_v35 }
 0x131   :  { %v225_v47 = vmax.f32 %v220_v42, 0.0  ;;  %v796_v42 = vld [vmem:[#allocation6 + $0x200] sm:$0xff] }
 0x132   :  { %v226_v51 = vpack.c.bf16 %v224_v44, %v222_v43  ;;  %v800_v43 = vld [vmem:[#allocation6 + $0x220] sm:$0xff]  ;;  %v797_v44 = vld [vmem:[#allocation6 + $0x208] sm:$0xff] }
 0x133   :  { %v227_v52 = vpack.c.bf16 %v225_v47, %v223_v46  ;;  %v2813_v46 = vcombine.low %v788_v34, %v792_v35  ;;  %v2815_v47 = vcombine.low %v789_v36, %v793_v37  ;;  %v2822_v48 = vcombine.high %v796_v42, %v800_v43  ;;  %v849_v35 = vld [vmem:[#allocation6 + $0x3a8] sm:$0xff] }
 0x134   :  { %v2824_v49 = vcombine.high %v797_v44, %v801_v45  ;;  %v2823_v55 = vcombine.low %v797_v44, %v801_v45 }
 0x135   :  { %666 = vmatprep.mubr.bf16.mxu1 %v227_v52  ;;  %709 = vmatprep.mubr.bf16.mxu0 %v227_v52  ;;  %v805_v52 = vld [vmem:[#allocation6 + $0x248] sm:$0xff] }
 0x136   :  { %667 = vmatmul.mubr.bf16.vlgmr.msra.gmra.mrb[0].mxu1 %v226_v51  ;;  %710 = vmatmul.mubr.bf16.vlgmr.msra.gmra.mrb[4].mxu0 %v226_v51  ;;  %v808_v51 = vld [vmem:[#allocation6 + $0x260] sm:$0xff] }
 0x137   :  { %2311 = vmatpush1.bf16.msra.mxu1 %v2757_v23  ;;  %2397 = vmatpush1.bf16.msra.mxu0 %v2759_v26  ;;  %v780_v23 = vld [vmem:[#allocation6 + $0x180] sm:$0xff]  ;;  %v785_v26 = vld [vmem:[#allocation6 + $0x1a8] sm:$0xff]  ;;  %v2830_v56 = vcombine.high %v804_v50, %v808_v51 }
 0x138   :  { %2312 = vmatprep.subr.bf16.mxu1 %v2766_v53  ;;  %2398 = vmatprep.subr.bf16.mxu0 %v2768_v54  ;;  %v2806_v31 = vcombine.high %v780_v23, %v784_v24  ;;  %v2808_v33 = vcombine.high %v781_v25, %v785_v26  ;;  %v2805_v38 = vcombine.low %v780_v23, %v784_v24  ;;  %v809_v53 = vld [vmem:[#allocation6 + $0x268] sm:$0xff] }
 0x139   :  { %v2807_v39 = vcombine.low %v781_v25, %v785_v26  ;;  %v2821_v54 = vcombine.low %v796_v42, %v800_v43  ;;  %v2832_v57 = vcombine.high %v805_v52, %v809_v53  ;;  %v2831_v63 = vcombine.low %v805_v52, %v809_v53  ;;  %v857_v43 = vld [vmem:[#allocation6 + $0x3e8] sm:$0xff] }
 0x13b   :  { %2313 = vmatpush1.bf16.msra.mxu1 %v2765_v59  ;;  %2399 = vmatpush1.bf16.msra.mxu0 %v2767_v60  ;;  %v816_v59 = vld [vmem:[#allocation6 + $0x2a0] sm:$0xff]  ;;  %v813_v60 = vld [vmem:[#allocation6 + $0x288] sm:$0xff] }
 0x13c   :  { %2314 = vmatprep.subr.bf16.mxu1 %v2774_v61  ;;  %2400 = vmatprep.subr.bf16.mxu0 %v2776_v62  ;;  %v817_v61 = vld [vmem:[#allocation6 + $0x2a8] sm:$0xff]  ;;  %v2829_v62 = vcombine.low %v804_v50, %v808_v51  ;;  %v2838_v0 = vcombine.high %v812_v58, %v816_v59 }
 0x13d   :  { %v2840_v1 = vcombine.high %v813_v60, %v817_v61  ;;  %v2839_v7 = vcombine.low %v813_v60, %v817_v61  ;;  %v865_v51 = vld [vmem:[#allocation6 + $0x428] sm:$0xff] }
 0x13f   :  { %2315 = vmatpush1.bf16.msra.mxu1 %v2773_v3  ;;  %2401 = vmatpush1.bf16.msra.mxu0 %v2775_v4  ;;  %v824_v3 = vld [vmem:[#allocation6 + $0x2e0] sm:$0xff]  ;;  %v821_v4 = vld [vmem:[#allocation6 + $0x2c8] sm:$0xff] }
 0x140   :  { %2316 = vmatprep.subr.bf16.mxu1 %v2782_v5  ;;  %2402 = vmatprep.subr.bf16.mxu0 %v2784_v6  ;;  %v825_v5 = vld [vmem:[#allocation6 + $0x2e8] sm:$0xff]  ;;  %v2837_v6 = vcombine.low %v812_v58, %v816_v59  ;;  %v2846_v8 = vcombine.high %v820_v2, %v824_v3 }
 0x141   :  { %v2848_v9 = vcombine.high %v821_v4, %v825_v5  ;;  %v2847_v15 = vcombine.low %v821_v4, %v825_v5 }
 0x143   :  { %2317 = vmatpush1.bf16.msra.mxu1 %v2781_v11  ;;  %2403 = vmatpush1.bf16.msra.mxu0 %v2783_v12  ;;  %v832_v11 = vld [vmem:[#allocation6 + $0x320] sm:$0xff]  ;;  %v829_v12 = vld [vmem:[#allocation6 + $0x308] sm:$0xff] }
 0x144   :  { %2318 = vmatprep.subr.bf16.mxu1 %v2790_v13  ;;  %2404 = vmatprep.subr.bf16.mxu0 %v2792_v14  ;;  %v833_v13 = vld [vmem:[#allocation6 + $0x328] sm:$0xff]  ;;  %v2845_v14 = vcombine.low %v820_v2, %v824_v3  ;;  %v2854_v16 = vcombine.high %v828_v10, %v832_v11 }
 0x145   :  { %v2856_v17 = vcombine.high %v829_v12, %v833_v13  ;;  %v2855_v23 = vcombine.low %v829_v12, %v833_v13 }
 0x147   :  { %2319 = vmatpush1.bf16.msra.mxu1 %v2789_v19  ;;  %2405 = vmatpush1.bf16.msra.mxu0 %v2791_v20  ;;  %v840_v19 = vld [vmem:[#allocation6 + $0x360] sm:$0xff]  ;;  %v837_v20 = vld [vmem:[#allocation6 + $0x348] sm:$0xff] }
 0x148   :  { %2320 = vmatprep.subr.bf16.mxu1 %v2798_v21  ;;  %2406 = vmatprep.subr.bf16.mxu0 %v2800_v22  ;;  %v841_v21 = vld [vmem:[#allocation6 + $0x368] sm:$0xff]  ;;  %v2853_v22 = vcombine.low %v828_v10, %v832_v11  ;;  %v2862_v24 = vcombine.high %v836_v18, %v840_v19  ;;  %v2861_v26 = vcombine.low %v836_v18, %v840_v19 }
 0x149   :  { %v2864_v25 = vcombine.high %v837_v20, %v841_v21 }
 0x14b   :  { %2321 = vmatpush1.bf16.msra.mxu1 %v2797_v27  ;;  %2407 = vmatpush1.bf16.msra.mxu0 %v2799_v28  ;;  %v2863_v27 = vcombine.low %v837_v20, %v841_v21  ;;  %v844_v28 = vld [vmem:[#allocation6 + $0x380] sm:$0xff] }
 0x14c   :  { %2322 = vmatprep.subr.bf16.mxu1 %v2806_v31  ;;  %2408 = vmatprep.subr.bf16.mxu0 %v2808_v33  ;;  %v848_v31 = vld [vmem:[#allocation6 + $0x3a0] sm:$0xff]  ;;  %v845_v33 = vld [vmem:[#allocation6 + $0x388] sm:$0xff] }
 0x14d   :  { %v2870_v34 = vcombine.high %v844_v28, %v848_v31  ;;  %v2869_v36 = vcombine.low %v844_v28, %v848_v31  ;;  %v2871_v37 = vcombine.low %v845_v33, %v849_v35 }
 0x14f   :  { %2323 = vmatpush1.bf16.msra.mxu1 %v2805_v38  ;;  %2409 = vmatpush1.bf16.msra.mxu0 %v2807_v39  ;;  %v2872_v38 = vcombine.high %v845_v33, %v849_v35  ;;  %v852_v39 = vld [vmem:[#allocation6 + $0x3c0] sm:$0xff] }
 0x150   :  { %2324 = vmatprep.subr.bf16.mxu1 %v2814_v40  ;;  %2410 = vmatprep.subr.bf16.mxu0 %v2816_v41  ;;  %v856_v40 = vld [vmem:[#allocation6 + $0x3e0] sm:$0xff]  ;;  %v853_v41 = vld [vmem:[#allocation6 + $0x3c8] sm:$0xff] }
 0x151   :  { %v2878_v42 = vcombine.high %v852_v39, %v856_v40  ;;  %v2877_v44 = vcombine.low %v852_v39, %v856_v40  ;;  %v2879_v45 = vcombine.low %v853_v41, %v857_v43  ;;  %v876_v33 = vld [vmem:[#allocation6 + $0x480] sm:$0xff] }
 0x153   :  { %2325 = vmatpush1.bf16.msra.mxu1 %v2813_v46  ;;  %2411 = vmatpush1.bf16.msra.mxu0 %v2815_v47  ;;  %v2880_v46 = vcombine.high %v853_v41, %v857_v43  ;;  %v860_v47 = vld [vmem:[#allocation6 + $0x400] sm:$0xff] }
 0x154   :  { %2326 = vmatprep.subr.bf16.mxu1 %v2822_v48  ;;  %2412 = vmatprep.subr.bf16.mxu0 %v2824_v49  ;;  %v864_v48 = vld [vmem:[#allocation6 + $0x420] sm:$0xff]  ;;  %v861_v49 = vld [vmem:[#allocation6 + $0x408] sm:$0xff] }
 0x155   :  { %v2886_v50 = vcombine.high %v860_v47, %v864_v48  ;;  %v2885_v52 = vcombine.low %v860_v47, %v864_v48  ;;  %v2887_v53 = vcombine.low %v861_v49, %v865_v51  ;;  %v884_v43 = vld [vmem:[#allocation6 + $0x4c0] sm:$0xff] }
 0x157   :  { %2327 = vmatpush1.bf16.msra.mxu1 %v2821_v54  ;;  %2413 = vmatpush1.bf16.msra.mxu0 %v2823_v55  ;;  %v2888_v54 = vcombine.high %v861_v49, %v865_v51  ;;  %v304_v55 = vsub.s32 2, %v3337_v29  ;;  %v892_v51 = vld [vmem:[#allocation6 + $0x500] sm:$0xff] }
 0x158   :  { %2328 = vmatprep.subr.bf16.mxu1 %v2830_v56  ;;  %2414 = vmatprep.subr.bf16.mxu0 %v2832_v57  ;;  %v292_v56 = vld [vmem:[%s3452_s4] sm:$0xf]  ;;  %v308_v57 = vsub.s32 3, %v3337_v29 }
 0x159   :  { %v297_v58 = vrot.slane %v292_v56, %v3340_v30  ;;  %v305_v59 = vrot.slane %v292_v56, %v304_v55  ;;  %v301_v60 = vrot.slane %v292_v56, %v3346_v32 }
 0x15a   :  { %v309_v61 = vrot.slane %v292_v56, %v308_v57 }
 0x15b   :  { %2329 = vmatpush1.bf16.msra.mxu1 %v2829_v62  ;;  %2415 = vmatpush1.bf16.msra.mxu0 %v2831_v63 }
 0x15c   :  { %2330 = vmatprep.subr.bf16.mxu1 %v2838_v0  ;;  %2416 = vmatprep.subr.bf16.mxu0 %v2840_v1 }
 0x15f   :  { %2331 = vmatpush1.bf16.msra.mxu1 %v2837_v6  ;;  %2417 = vmatpush1.bf16.msra.mxu0 %v2839_v7 }
 0x160   :  { %2332 = vmatprep.subr.bf16.mxu1 %v2846_v8  ;;  %2418 = vmatprep.subr.bf16.mxu0 %v2848_v9 }
 0x163   :  { %2333 = vmatpush1.bf16.msra.mxu1 %v2845_v14  ;;  %2419 = vmatpush1.bf16.msra.mxu0 %v2847_v15 }
 0x164   :  { %2334 = vmatprep.subr.bf16.mxu1 %v2854_v16  ;;  %2420 = vmatprep.subr.bf16.mxu0 %v2856_v17 }
 0x167   :  { %2335 = vmatpush1.bf16.msra.mxu1 %v2853_v22  ;;  %2421 = vmatpush1.bf16.msra.mxu0 %v2855_v23  ;;  %v868_v22 = vld [vmem:[#allocation6 + $0x440] sm:$0xff] }
 0x168   :  { %2336 = vmatprep.subr.bf16.mxu1 %v2862_v24  ;;  %2422 = vmatprep.subr.bf16.mxu0 %v2864_v25  ;;  %v872_v25 = vld [vmem:[#allocation6 + $0x460] sm:$0xff] }
 0x169   :  { %v2893_v39 = vcombine.low %v868_v22, %v872_v25 }
 0x16b   :  { %2337 = vmatpush1.bf16.msra.mxu1 %v2861_v26  ;;  %2423 = vmatpush1.bf16.msra.mxu0 %v2863_v27  ;;  %v869_v26 = vld [vmem:[#allocation6 + $0x448] sm:$0xff] }
 0x16c   :  { %2338 = vmatprep.subr.bf16.mxu1 %v2870_v34  ;;  %2424 = vmatprep.subr.bf16.mxu0 %v2872_v38  ;;  %v873_v27 = vld [vmem:[#allocation6 + $0x468] sm:$0xff]  ;;  %v2894_v34 = vcombine.high %v868_v22, %v872_v25  ;;  %v928_v22 = vld [vmem:[#allocation6 + $0x620] sm:$0xff] }
 0x16d   :  { %v2896_v35 = vcombine.high %v869_v26, %v873_v27  ;;  %v881_v38 = vld [vmem:[#allocation6 + $0x4a8] sm:$0xff]  ;;  %v2895_v40 = vcombine.low %v869_v26, %v873_v27 }
 0x16e   :  { %v925_v25 = vld [vmem:[#allocation6 + $0x608] sm:$0xff] }
 0x16f   :  { %2339 = vmatpush1.bf16.msra.mxu1 %v2869_v36  ;;  %2425 = vmatpush1.bf16.msra.mxu0 %v2871_v37  ;;  %v880_v36 = vld [vmem:[#allocation6 + $0x4a0] sm:$0xff]  ;;  %v877_v37 = vld [vmem:[#allocation6 + $0x488] sm:$0xff] }
 0x170   :  { %2340 = vmatprep.subr.bf16.mxu1 %v2878_v42  ;;  %2426 = vmatprep.subr.bf16.mxu0 %v2880_v46  ;;  %v2902_v41 = vcombine.high %v876_v33, %v880_v36  ;;  %v2904_v42 = vcombine.high %v877_v37, %v881_v38  ;;  %v889_v46 = vld [vmem:[#allocation6 + $0x4e8] sm:$0xff]  ;;  %v2901_v47 = vcombine.low %v876_v33, %v880_v36  ;;  %v932_v36 = vld [vmem:[#allocation6 + $0x640] sm:$0xff] }
 0x171   :  { %v2903_v48 = vcombine.low %v877_v37, %v881_v38  ;;  %v929_v26 = vld [vmem:[#allocation6 + $0x628] sm:$0xff]  ;;  %v936_v37 = vld [vmem:[#allocation6 + $0x660] sm:$0xff] }
 0x172   :  { %v933_v38 = vld [vmem:[#allocation6 + $0x648] sm:$0xff] }
 0x173   :  { %2341 = vmatpush1.bf16.msra.mxu1 %v2877_v44  ;;  %2427 = vmatpush1.bf16.msra.mxu0 %v2879_v45  ;;  %v888_v44 = vld [vmem:[#allocation6 + $0x4e0] sm:$0xff]  ;;  %v885_v45 = vld [vmem:[#allocation6 + $0x4c8] sm:$0xff] }
 0x174   :  { %2353 = vmatprep.subr.bf16.mxu1 %v2886_v50  ;;  %2439 = vmatprep.subr.bf16.mxu0 %v2888_v54  ;;  %v2910_v49 = vcombine.high %v884_v43, %v888_v44  ;;  %v2912_v50 = vcombine.high %v885_v45, %v889_v46  ;;  %v897_v54 = vld [vmem:[#allocation6 + $0x528] sm:$0xff]  ;;  %v2909_v56 = vcombine.low %v884_v43, %v888_v44  ;;  %v940_v44 = vld [vmem:[#allocation6 + $0x680] sm:$0xff] }
 0x209   :  { %v668_v62 = vpop.f32.mrb[0].mxu1  ;;  %v711_v63 = vpop.f32.mrb[4].mxu0 }
 0x20a   :  { %v669_v0 = vadd.f32 %v668_v62, %v297_v58  ;;  %v712_v1 = vadd.f32 %v711_v63, %v305_v59  ;;  %v670_v2 = vpop.f32.mrb[1].mxu1  ;;  %v713_v3 = vpop.f32.mrb[5].mxu0  ;;  %v904_v62 = vld [vmem:[#allocation6 + $0x560] sm:$0xff]  ;;  %v901_v63 = vld [vmem:[#allocation6 + $0x548] sm:$0xff] }
 0x20b   :  { %v671_v4 = vadd.f32 %v670_v2, %v301_v60  ;;  %v714_v5 = vadd.f32 %v713_v3, %v309_v61  ;;  %v672_v6 = vpop.f32.mrb[2].mxu1  ;;  %v715_v7 = vpop.f32.mrb[6].mxu0 }
 0x20c   :  { %v673_v8 = vadd.f32 %v672_v6, %v297_v58  ;;  %v716_v9 = vadd.f32 %v715_v7, %v305_v59  ;;  %v674_v10 = vpop.f32.mrb[3].mxu1  ;;  %v717_v11 = vpop.f32.mrb[7].mxu0  ;;  %v720_v14 = vmax.f32 %v669_v0, 0.0  ;;  %v722_v15 = vmax.f32 %v712_v1, 0.0  ;;  %v905_v0 = vld [vmem:[#allocation6 + $0x568] sm:$0xff]  ;;  %v912_v6 = vld [vmem:[#allocation6 + $0x5a0] sm:$0xff] }
 0x20d   :  { %v675_v12 = vadd.f32 %v674_v10, %v301_v60  ;;  %v718_v13 = vadd.f32 %v717_v11, %v309_v61  ;;  %v721_v18 = vmax.f32 %v671_v4, 0.0  ;;  %v723_v19 = vmax.f32 %v714_v5, 0.0  ;;  %v900_v61 = vld [vmem:[#allocation6 + $0x540] sm:$0xff]  ;;  %v909_v7 = vld [vmem:[#allocation6 + $0x588] sm:$0xff] }
 0x20e   :  { %v724_v16 = vmax.f32 %v673_v8, 0.0  ;;  %v726_v17 = vmax.f32 %v716_v9, 0.0  ;;  %v2911_v58 = vcombine.low %v885_v45, %v889_v46  ;;  %v2926_v3 = vcombine.high %v900_v61, %v904_v62  ;;  %v908_v5 = vld [vmem:[#allocation6 + $0x580] sm:$0xff]  ;;  %v913_v8 = vld [vmem:[#allocation6 + $0x5a8] sm:$0xff] }
 0x20f   :  { %v725_v20 = vmax.f32 %v675_v12, 0.0  ;;  %v727_v21 = vmax.f32 %v718_v13, 0.0  ;;  %v2928_v4 = vcombine.high %v901_v63, %v905_v0  ;;  %v2925_v9 = vcombine.low %v900_v61, %v904_v62  ;;  %v916_v13 = vld [vmem:[#allocation6 + $0x5c0] sm:$0xff]  ;;  %v941_v46 = vld [vmem:[#allocation6 + $0x688] sm:$0xff] }
 0x210   :  { %v3361_v23 = vpack.c.bf16 %v724_v16, %v720_v14  ;;  %v3363_v24 = vpack.c.bf16 %v726_v17, %v722_v15  ;;  %v2927_v10 = vcombine.low %v901_v63, %v905_v0  ;;  %v2934_v11 = vcombine.high %v908_v5, %v912_v6  ;;  %v920_v14 = vld [vmem:[#allocation6 + $0x5e0] sm:$0xff]  ;;  %v917_v15 = vld [vmem:[#allocation6 + $0x5c8] sm:$0xff] }
 0x211   :  { %v3365_v28 = vpack.c.bf16 %v725_v20, %v721_v18  ;;  %v3367_v31 = vpack.c.bf16 %v727_v21, %v723_v19  ;;  %v2936_v12 = vcombine.high %v909_v7, %v913_v8  ;;  %v921_v16 = vld [vmem:[#allocation6 + $0x5e8] sm:$0xff]  ;;  %v2933_v17 = vcombine.low %v908_v5, %v912_v6  ;;  %v924_v21 = vld [vmem:[#allocation6 + $0x600] sm:$0xff] }
 0x212   :  { %v2935_v18 = vcombine.low %v909_v7, %v913_v8  ;;  %v2942_v19 = vcombine.high %v916_v13, %v920_v14  ;;  %v2944_v20 = vcombine.high %v917_v15, %v921_v16  ;;  %v2941_v27 = vcombine.low %v916_v13, %v920_v14  ;;  %v944_v45 = vld [vmem:[#allocation6 + $0x6a0] sm:$0xff]  ;;  %v957_v0 = vld [vmem:[#allocation6 + $0x708] sm:$0xff] }
 0x213   :  { %2342 = vmatprep.mubr.bf16.mxu1 %v3365_v28  ;;  %2428 = vmatprep.mubr.bf16.mxu0 %v3365_v28  ;;  %v2943_v33 = vcombine.low %v917_v15, %v921_v16  ;;  %v956_v62 = vld [vmem:[#allocation6 + $0x700] sm:$0xff]  ;;  %v965_v8 = vld [vmem:[#allocation6 + $0x748] sm:$0xff] }
 0x214   :  { %2343 = vmatmul.mubr.bf16.vlgmr.msra.gmra.mrb[4].mxu1 %v3361_v23  ;;  %2429 = vmatmul.mubr.bf16.vlgmr.msra.gmra.mrb[8].mxu0 %v3361_v23  ;;  %v960_v63 = vld [vmem:[#allocation6 + $0x720] sm:$0xff]  ;;  %v973_v16 = vld [vmem:[#allocation6 + $0x788] sm:$0xff] }
 0x215   :  { %2354 = vmatpush1.bf16.msra.mxu1 %v2885_v52  ;;  %2440 = vmatpush1.bf16.msra.mxu0 %v2887_v53  ;;  %v896_v52 = vld [vmem:[#allocation6 + $0x520] sm:$0xff]  ;;  %v893_v53 = vld [vmem:[#allocation6 + $0x508] sm:$0xff] }
 0x216   :  { %2385 = vmatprep.mubr.bf16.mxu1 %v3367_v31  ;;  %2471 = vmatprep.mubr.bf16.mxu0 %v3367_v31  ;;  %v2918_v59 = vcombine.high %v892_v51, %v896_v52  ;;  %v2920_v60 = vcombine.high %v893_v53, %v897_v54  ;;  %v2917_v1 = vcombine.low %v892_v51, %v896_v52  ;;  %v948_v52 = vld [vmem:[#allocation6 + $0x6c0] sm:$0xff] }
 0x217   :  { %2355 = vmatprep.subr.bf16.mxu1 %v2894_v34  ;;  %2441 = vmatprep.subr.bf16.mxu0 %v2896_v35  ;;  %v2919_v2 = vcombine.low %v893_v53, %v897_v54  ;;  %v2950_v34 = vcombine.high %v924_v21, %v928_v22  ;;  %v2952_v35 = vcombine.high %v925_v25, %v929_v26  ;;  %v952_v53 = vld [vmem:[#allocation6 + $0x6e0] sm:$0xff]  ;;  %v949_v54 = vld [vmem:[#allocation6 + $0x6c8] sm:$0xff] }
 0x218   :  { %v964_v6 = vld [vmem:[#allocation6 + $0x740] sm:$0xff] }
 0x219   :  { %2356 = vmatpush1.bf16.msra.mxu1 %v2893_v39  ;;  %2442 = vmatpush1.bf16.msra.mxu0 %v2895_v40  ;;  %v937_v39 = vld [vmem:[#allocation6 + $0x668] sm:$0xff]  ;;  %v2949_v40 = vcombine.low %v924_v21, %v928_v22  ;;  %v968_v7 = vld [vmem:[#allocation6 + $0x760] sm:$0xff] }
 0x21a   :  { %2357 = vmatprep.subr.bf16.mxu1 %v2902_v41  ;;  %2443 = vmatprep.subr.bf16.mxu0 %v2904_v42  ;;  %v2951_v41 = vcombine.low %v925_v25, %v929_v26  ;;  %v2958_v42 = vcombine.high %v932_v36, %v936_v37  ;;  %v2960_v43 = vcombine.high %v933_v38, %v937_v39  ;;  %v972_v14 = vld [vmem:[#allocation6 + $0x780] sm:$0xff]  ;;  %v981_v26 = vld [vmem:[#allocation6 + $0x7c8] sm:$0xff] }
 0x21b   :  { %v976_v15 = vld [vmem:[#allocation6 + $0x7a0] sm:$0xff] }
 0x21c   :  { %v980_v22 = vld [vmem:[#allocation6 + $0x7c0] sm:$0xff] }
 0x21d   :  { %2358 = vmatpush1.bf16.msra.mxu1 %v2901_v47  ;;  %2444 = vmatpush1.bf16.msra.mxu0 %v2903_v48  ;;  %v945_v47 = vld [vmem:[#allocation6 + $0x6a8] sm:$0xff]  ;;  %v2957_v48 = vcombine.low %v932_v36, %v936_v37  ;;  %v984_v25 = vld [vmem:[#allocation6 + $0x7e0] sm:$0xff]  ;;  %v734_v37 = vld [vmem:[#allocation6 + $0x10] sm:$0xff] }
 0x21e   :  { %2359 = vmatprep.subr.bf16.mxu1 %v2910_v49  ;;  %2445 = vmatprep.subr.bf16.mxu0 %v2912_v50  ;;  %v2959_v49 = vcombine.low %v933_v38, %v937_v39  ;;  %v2966_v50 = vcombine.high %v940_v44, %v944_v45  ;;  %v2968_v51 = vcombine.high %v941_v46, %v945_v47  ;;  %v738_v38 = vld [vmem:[#allocation6 + $0x30] sm:$0xff]  ;;  %v735_v39 = vld [vmem:[#allocation6 + $0x18] sm:$0xff] }
 0x221   :  { %2360 = vmatpush1.bf16.msra.mxu1 %v2909_v56  ;;  %2446 = vmatpush1.bf16.msra.mxu0 %v2911_v58  ;;  %v953_v56 = vld [vmem:[#allocation6 + $0x6e8] sm:$0xff]  ;;  %v2965_v58 = vcombine.low %v940_v44, %v944_v45  ;;  %v742_v45 = vld [vmem:[#allocation6 + $0x50] sm:$0xff] }
 0x222   :  { %2361 = vmatprep.subr.bf16.mxu1 %v2918_v59  ;;  %2447 = vmatprep.subr.bf16.mxu0 %v2920_v60  ;;  %v2967_v59 = vcombine.low %v941_v46, %v945_v47  ;;  %v2974_v60 = vcombine.high %v948_v52, %v952_v53  ;;  %v2976_v61 = vcombine.high %v949_v54, %v953_v56  ;;  %v746_v46 = vld [vmem:[#allocation6 + $0x70] sm:$0xff]  ;;  %v743_v47 = vld [vmem:[#allocation6 + $0x58] sm:$0xff] }
 0x225   :  { %2362 = vmatpush1.bf16.msra.mxu1 %v2917_v1  ;;  %2448 = vmatpush1.bf16.msra.mxu0 %v2919_v2  ;;  %v961_v1 = vld [vmem:[#allocation6 + $0x728] sm:$0xff]  ;;  %v2973_v2 = vcombine.low %v948_v52, %v952_v53  ;;  %v750_v53 = vld [vmem:[#allocation6 + $0x90] sm:$0xff] }
 0x226   :  { %2363 = vmatprep.subr.bf16.mxu1 %v2926_v3  ;;  %2449 = vmatprep.subr.bf16.mxu0 %v2928_v4  ;;  %v2975_v3 = vcombine.low %v949_v54, %v953_v56  ;;  %v2982_v4 = vcombine.high %v956_v62, %v960_v63  ;;  %v2984_v5 = vcombine.high %v957_v0, %v961_v1  ;;  %v754_v54 = vld [vmem:[#allocation6 + $0xb0] sm:$0xff]  ;;  %v751_v56 = vld [vmem:[#allocation6 + $0x98] sm:$0xff] }
 0x229   :  { %2364 = vmatpush1.bf16.msra.mxu1 %v2925_v9  ;;  %2450 = vmatpush1.bf16.msra.mxu0 %v2927_v10  ;;  %v969_v9 = vld [vmem:[#allocation6 + $0x768] sm:$0xff]  ;;  %v2981_v10 = vcombine.low %v956_v62, %v960_v63  ;;  %v758_v63 = vld [vmem:[#allocation6 + $0xd0] sm:$0xff] }
 0x22a   :  { %2365 = vmatprep.subr.bf16.mxu1 %v2934_v11  ;;  %2451 = vmatprep.subr.bf16.mxu0 %v2936_v12  ;;  %v2983_v11 = vcombine.low %v957_v0, %v961_v1  ;;  %v2990_v12 = vcombine.high %v964_v6, %v968_v7  ;;  %v2992_v13 = vcombine.high %v965_v8, %v969_v9  ;;  %v762_v0 = vld [vmem:[#allocation6 + $0xf0] sm:$0xff]  ;;  %v759_v1 = vld [vmem:[#allocation6 + $0xd8] sm:$0xff] }
 0x22d   :  { %2366 = vmatpush1.bf16.msra.mxu1 %v2933_v17  ;;  %2452 = vmatpush1.bf16.msra.mxu0 %v2935_v18  ;;  %v977_v17 = vld [vmem:[#allocation6 + $0x7a8] sm:$0xff]  ;;  %v2989_v18 = vcombine.low %v964_v6, %v968_v7  ;;  %v766_v7 = vld [vmem:[#allocation6 + $0x110] sm:$0xff] }
 0x22e   :  { %2367 = vmatprep.subr.bf16.mxu1 %v2942_v19  ;;  %2453 = vmatprep.subr.bf16.mxu0 %v2944_v20  ;;  %v2991_v19 = vcombine.low %v965_v8, %v969_v9  ;;  %v2998_v20 = vcombine.high %v972_v14, %v976_v15  ;;  %v3000_v21 = vcombine.high %v973_v16, %v977_v17  ;;  %v770_v8 = vld [vmem:[#allocation6 + $0x130] sm:$0xff]  ;;  %v771_v9 = vld [vmem:[#allocation6 + $0x138] sm:$0xff] }
 0x231   :  { %2368 = vmatpush1.bf16.msra.mxu1 %v2941_v27  ;;  %2454 = vmatpush1.bf16.msra.mxu0 %v2943_v33  ;;  %v985_v27 = vld [vmem:[#allocation6 + $0x7e8] sm:$0xff]  ;;  %v2997_v33 = vcombine.low %v972_v14, %v976_v15  ;;  %v774_v14 = vld [vmem:[#allocation6 + $0x150] sm:$0xff] }
 0x232   :  { %2369 = vmatprep.subr.bf16.mxu1 %v2950_v34  ;;  %2455 = vmatprep.subr.bf16.mxu0 %v2952_v35  ;;  %v2999_v34 = vcombine.low %v973_v16, %v977_v17  ;;  %v3006_v35 = vcombine.high %v980_v22, %v984_v25  ;;  %v3008_v36 = vcombine.high %v981_v26, %v985_v27  ;;  %v778_v15 = vld [vmem:[#allocation6 + $0x170] sm:$0xff]  ;;  %v775_v16 = vld [vmem:[#allocation6 + $0x158] sm:$0xff] }
 0x233   :  { %v779_v17 = vld [vmem:[#allocation6 + $0x178] sm:$0xff] }
 0x235   :  { %2370 = vmatpush1.bf16.msra.mxu1 %v2949_v40  ;;  %2456 = vmatpush1.bf16.msra.mxu0 %v2951_v41  ;;  %v739_v40 = vld [vmem:[#allocation6 + $0x38] sm:$0xff]  ;;  %v3005_v41 = vcombine.low %v980_v22, %v984_v25  ;;  %v782_v22 = vld [vmem:[#allocation6 + $0x190] sm:$0xff] }
 0x236   :  { %2371 = vmatprep.subr.bf16.mxu1 %v2958_v42  ;;  %2457 = vmatprep.subr.bf16.mxu0 %v2960_v43  ;;  %v3007_v42 = vcombine.low %v981_v26, %v985_v27  ;;  %v2762_v43 = vcombine.high %v734_v37, %v738_v38  ;;  %v2764_v44 = vcombine.high %v735_v39, %v739_v40  ;;  %v786_v25 = vld [vmem:[#allocation6 + $0x1b0] sm:$0xff]  ;;  %v783_v26 = vld [vmem:[#allocation6 + $0x198] sm:$0xff] }
 0x237   :  { %v787_v27 = vld [vmem:[#allocation6 + $0x1b8] sm:$0xff] }
 0x239   :  { %2372 = vmatpush1.bf16.msra.mxu1 %v2957_v48  ;;  %2458 = vmatpush1.bf16.msra.mxu0 %v2959_v49  ;;  %v747_v48 = vld [vmem:[#allocation6 + $0x78] sm:$0xff]  ;;  %v2761_v49 = vcombine.low %v734_v37, %v738_v38  ;;  %v790_v37 = vld [vmem:[#allocation6 + $0x1d0] sm:$0xff] }
 0x23a   :  { %2373 = vmatprep.subr.bf16.mxu1 %v2966_v50  ;;  %2459 = vmatprep.subr.bf16.mxu0 %v2968_v51  ;;  %v2763_v50 = vcombine.low %v735_v39, %v739_v40  ;;  %v2770_v51 = vcombine.high %v742_v45, %v746_v46  ;;  %v2772_v52 = vcombine.high %v743_v47, %v747_v48  ;;  %v794_v38 = vld [vmem:[#allocation6 + $0x1f0] sm:$0xff]  ;;  %v791_v39 = vld [vmem:[#allocation6 + $0x1d8] sm:$0xff] }
 0x23b   :  { %v795_v40 = vld [vmem:[#allocation6 + $0x1f8] sm:$0xff] }
 0x23d   :  { %2374 = vmatpush1.bf16.msra.mxu1 %v2965_v58  ;;  %2460 = vmatpush1.bf16.msra.mxu0 %v2967_v59  ;;  %v755_v58 = vld [vmem:[#allocation6 + $0xb8] sm:$0xff]  ;;  %v2769_v59 = vcombine.low %v742_v45, %v746_v46  ;;  %v798_v45 = vld [vmem:[#allocation6 + $0x210] sm:$0xff] }
 0x23e   :  { %2375 = vmatprep.subr.bf16.mxu1 %v2974_v60  ;;  %2461 = vmatprep.subr.bf16.mxu0 %v2976_v61  ;;  %v2771_v60 = vcombine.low %v743_v47, %v747_v48  ;;  %v2778_v61 = vcombine.high %v750_v53, %v754_v54  ;;  %v2780_v62 = vcombine.high %v751_v56, %v755_v58  ;;  %v802_v46 = vld [vmem:[#allocation6 + $0x230] sm:$0xff]  ;;  %v799_v47 = vld [vmem:[#allocation6 + $0x218] sm:$0xff] }
 0x23f   :  { %v803_v48 = vld [vmem:[#allocation6 + $0x238] sm:$0xff] }
 0x241   :  { %2376 = vmatpush1.bf16.msra.mxu1 %v2973_v2  ;;  %2462 = vmatpush1.bf16.msra.mxu0 %v2975_v3  ;;  %v763_v2 = vld [vmem:[#allocation6 + $0xf8] sm:$0xff]  ;;  %v2777_v3 = vcombine.low %v750_v53, %v754_v54  ;;  %v806_v53 = vld [vmem:[#allocation6 + $0x250] sm:$0xff] }
 0x242   :  { %2377 = vmatprep.subr.bf16.mxu1 %v2982_v4  ;;  %2463 = vmatprep.subr.bf16.mxu0 %v2984_v5  ;;  %v2779_v4 = vcombine.low %v751_v56, %v755_v58  ;;  %v2786_v5 = vcombine.high %v758_v63, %v762_v0  ;;  %v2788_v6 = vcombine.high %v759_v1, %v763_v2  ;;  %v810_v54 = vld [vmem:[#allocation6 + $0x270] sm:$0xff]  ;;  %v807_v56 = vld [vmem:[#allocation6 + $0x258] sm:$0xff] }
 0x243   :  { %v811_v58 = vld [vmem:[#allocation6 + $0x278] sm:$0xff] }
 0x245   :  { %2378 = vmatpush1.bf16.msra.mxu1 %v2981_v10  ;;  %2464 = vmatpush1.bf16.msra.mxu0 %v2983_v11  ;;  %v2785_v10 = vcombine.low %v758_v63, %v762_v0  ;;  %v2787_v11 = vcombine.low %v759_v1, %v763_v2  ;;  %v814_v63 = vld [vmem:[#allocation6 + $0x290] sm:$0xff]  ;;  %v815_v1 = vld [vmem:[#allocation6 + $0x298] sm:$0xff] }
 0x246   :  { %2379 = vmatprep.subr.bf16.mxu1 %v2990_v12  ;;  %2465 = vmatprep.subr.bf16.mxu0 %v2992_v13  ;;  %v2794_v12 = vcombine.high %v766_v7, %v770_v8  ;;  %v818_v0 = vld [vmem:[#allocation6 + $0x2b0] sm:$0xff]  ;;  %v819_v2 = vld [vmem:[#allocation6 + $0x2b8] sm:$0xff] }
 0x249   :  { %2380 = vmatpush1.bf16.msra.mxu1 %v2989_v18  ;;  %2466 = vmatpush1.bf16.msra.mxu0 %v2991_v19  ;;  %v2793_v18 = vcombine.low %v766_v7, %v770_v8  ;;  %v822_v7 = vld [vmem:[#allocation6 + $0x2d0] sm:$0xff] }
 0x24a   :  { %2381 = vmatprep.subr.bf16.mxu1 %v2998_v20  ;;  %2467 = vmatprep.subr.bf16.mxu0 %v3000_v21  ;;  %v2802_v20 = vcombine.high %v774_v14, %v778_v15  ;;  %v2804_v21 = vcombine.high %v775_v16, %v779_v17  ;;  %v826_v8 = vld [vmem:[#allocation6 + $0x2f0] sm:$0xff] }
 0x24d   :  { %2382 = vmatpush1.bf16.msra.mxu1 %v2997_v33  ;;  %2468 = vmatpush1.bf16.msra.mxu0 %v2999_v34  ;;  %v2801_v33 = vcombine.low %v774_v14, %v778_v15  ;;  %v2803_v34 = vcombine.low %v775_v16, %v779_v17  ;;  %v830_v14 = vld [vmem:[#allocation6 + $0x310] sm:$0xff]  ;;  %v831_v16 = vld [vmem:[#allocation6 + $0x318] sm:$0xff] }
 0x24e   :  { %2383 = vmatprep.subr.bf16.mxu1 %v3006_v35  ;;  %2469 = vmatprep.subr.bf16.mxu0 %v3008_v36  ;;  %v2810_v35 = vcombine.high %v782_v22, %v786_v25  ;;  %v2812_v36 = vcombine.high %v783_v26, %v787_v27  ;;  %v834_v15 = vld [vmem:[#allocation6 + $0x330] sm:$0xff]  ;;  %v835_v17 = vld [vmem:[#allocation6 + $0x338] sm:$0xff] }
 0x251   :  { %2384 = vmatpush1.bf16.msra.mxu1 %v3005_v41  ;;  %2470 = vmatpush1.bf16.msra.mxu0 %v3007_v42  ;;  %v2809_v41 = vcombine.low %v782_v22, %v786_v25  ;;  %v2811_v42 = vcombine.low %v783_v26, %v787_v27  ;;  %v838_v22 = vld [vmem:[#allocation6 + $0x350] sm:$0xff]  ;;  %v839_v26 = vld [vmem:[#allocation6 + $0x358] sm:$0xff] }
 0x252   :  { %2482 = vmatprep.subr.bf16.mxu1 %v2762_v43  ;;  %2568 = vmatprep.subr.bf16.mxu0 %v2764_v44  ;;  %v2818_v43 = vcombine.high %v790_v37, %v794_v38  ;;  %v2820_v44 = vcombine.high %v791_v39, %v795_v40  ;;  %v842_v25 = vld [vmem:[#allocation6 + $0x370] sm:$0xff]  ;;  %v843_v27 = vld [vmem:[#allocation6 + $0x378] sm:$0xff] }
 0x254   :  { %2386 = vmatmul.mubr.bf16.vlgmr.msra.gmra.mrb[4].mxu1 %v3363_v24  ;;  %2472 = vmatmul.mubr.bf16.vlgmr.msra.gmra.mrb[8].mxu0 %v3363_v24 }
 0x255   :  { %2483 = vmatpush1.bf16.msra.mxu1 %v2761_v49  ;;  %2514 = vmatprep.mubr.bf16.mxu1 %v3365_v28  ;;  %v2817_v49 = vcombine.low %v790_v37, %v794_v38  ;;  %v846_v37 = vld [vmem:[#allocation6 + $0x390] sm:$0xff] }
 0x256   :  { %2569 = vmatpush1.bf16.msra.mxu0 %v2763_v50  ;;  %2600 = vmatprep.mubr.bf16.mxu0 %v3365_v28  ;;  %v767_v28 = vld [vmem:[#allocation6 + $0x118] sm:$0xff]  ;;  %v2819_v50 = vcombine.low %v791_v39, %v795_v40  ;;  %v850_v38 = vld [vmem:[#allocation6 + $0x3b0] sm:$0xff] }
 0x257   :  { %2484 = vmatprep.subr.bf16.mxu1 %v2770_v51  ;;  %2570 = vmatprep.subr.bf16.mxu0 %v2772_v52  ;;  %v2796_v13 = vcombine.high %v767_v28, %v771_v9  ;;  %v2795_v19 = vcombine.low %v767_v28, %v771_v9  ;;  %v2826_v51 = vcombine.high %v798_v45, %v802_v46  ;;  %v823_v28 = vld [vmem:[#allocation6 + $0x2d8] sm:$0xff] }
 0x258   :  { %v2828_v52 = vcombine.high %v799_v47, %v803_v48  ;;  %v827_v9 = vld [vmem:[#allocation6 + $0x2f8] sm:$0xff] }
 0x259   :  { %2485 = vmatpush1.bf16.msra.mxu1 %v2769_v59  ;;  %v2825_v59 = vcombine.low %v798_v45, %v802_v46  ;;  %v847_v39 = vld [vmem:[#allocation6 + $0x398] sm:$0xff]  ;;  %v854_v45 = vld [vmem:[#allocation6 + $0x3d0] sm:$0xff] }
 0x25a   :  { %2571 = vmatpush1.bf16.msra.mxu0 %v2771_v60  ;;  %2486 = vmatprep.subr.bf16.mxu1 %v2778_v61  ;;  %v2827_v60 = vcombine.low %v799_v47, %v803_v48  ;;  %v2834_v61 = vcombine.high %v806_v53, %v810_v54  ;;  %v851_v40 = vld [vmem:[#allocation6 + $0x3b8] sm:$0xff]  ;;  %v858_v46 = vld [vmem:[#allocation6 + $0x3f0] sm:$0xff] }
 0x25b   :  { %2572 = vmatprep.subr.bf16.mxu0 %v2780_v62  ;;  %v2836_v62 = vcombine.high %v807_v56, %v811_v58  ;;  %v855_v47 = vld [vmem:[#allocation6 + $0x3d8] sm:$0xff] }
 0x25c   :  { %v859_v48 = vld [vmem:[#allocation6 + $0x3f8] sm:$0xff] }
 0x25d   :  { %2487 = vmatpush1.bf16.msra.mxu1 %v2777_v3  ;;  %v2833_v3 = vcombine.low %v806_v53, %v810_v54  ;;  %v862_v53 = vld [vmem:[#allocation6 + $0x410] sm:$0xff] }
 0x25e   :  { %2573 = vmatpush1.bf16.msra.mxu0 %v2779_v4  ;;  %2488 = vmatprep.subr.bf16.mxu1 %v2786_v5  ;;  %v2835_v4 = vcombine.low %v807_v56, %v811_v58  ;;  %v2842_v5 = vcombine.high %v814_v63, %v818_v0  ;;  %v866_v54 = vld [vmem:[#allocation6 + $0x430] sm:$0xff]  ;;  %v863_v56 = vld [vmem:[#allocation6 + $0x418] sm:$0xff] }
 0x25f   :  { %2574 = vmatprep.subr.bf16.mxu0 %v2788_v6  ;;  %v2844_v6 = vcombine.high %v815_v1, %v819_v2  ;;  %v867_v58 = vld [vmem:[#allocation6 + $0x438] sm:$0xff] }
 0x261   :  { %2489 = vmatpush1.bf16.msra.mxu1 %v2785_v10  ;;  %v2841_v10 = vcombine.low %v814_v63, %v818_v0  ;;  %v870_v63 = vld [vmem:[#allocation6 + $0x450] sm:$0xff] }
 0x262   :  { %2575 = vmatpush1.bf16.msra.mxu0 %v2787_v11  ;;  %2490 = vmatprep.subr.bf16.mxu1 %v2794_v12  ;;  %v2843_v11 = vcombine.low %v815_v1, %v819_v2  ;;  %v2850_v12 = vcombine.high %v822_v7, %v826_v8  ;;  %v874_v0 = vld [vmem:[#allocation6 + $0x470] sm:$0xff]  ;;  %v2889_v1 = vcombine.low %v862_v53, %v866_v54  ;;  %v871_v2 = vld [vmem:[#allocation6 + $0x458] sm:$0xff] }
 0x263   :  { %2576 = vmatprep.subr.bf16.mxu0 %v2796_v13  ;;  %v2852_v13 = vcombine.high %v823_v28, %v827_v9 }
 0x265   :  { %2491 = vmatpush1.bf16.msra.mxu1 %v2793_v18  ;;  %v2849_v18 = vcombine.low %v822_v7, %v826_v8  ;;  %v882_v7 = vld [vmem:[#allocation6 + $0x4b0] sm:$0xff] }
 0x266   :  { %2577 = vmatpush1.bf16.msra.mxu0 %v2795_v19  ;;  %2492 = vmatprep.subr.bf16.mxu1 %v2802_v20  ;;  %v2851_v19 = vcombine.low %v823_v28, %v827_v9  ;;  %v2858_v20 = vcombine.high %v830_v14, %v834_v15  ;;  %v879_v28 = vld [vmem:[#allocation6 + $0x498] sm:$0xff] }
 0x267   :  { %2578 = vmatprep.subr.bf16.mxu0 %v2804_v21  ;;  %v2860_v21 = vcombine.high %v831_v16, %v835_v17  ;;  %v883_v9 = vld [vmem:[#allocation6 + $0x4b8] sm:$0xff] }
 0x269   :  { %2493 = vmatpush1.bf16.msra.mxu1 %v2801_v33  ;;  %v2857_v33 = vcombine.low %v830_v14, %v834_v15  ;;  %v886_v14 = vld [vmem:[#allocation6 + $0x4d0] sm:$0xff] }
 0x26a   :  { %2579 = vmatpush1.bf16.msra.mxu0 %v2803_v34  ;;  %2494 = vmatprep.subr.bf16.mxu1 %v2810_v35  ;;  %v2859_v34 = vcombine.low %v831_v16, %v835_v17  ;;  %v2866_v35 = vcombine.high %v838_v22, %v842_v25  ;;  %v890_v15 = vld [vmem:[#allocation6 + $0x4f0] sm:$0xff]  ;;  %v887_v16 = vld [vmem:[#allocation6 + $0x4d8] sm:$0xff] }
 0x26b   :  { %2580 = vmatprep.subr.bf16.mxu0 %v2812_v36  ;;  %v2868_v36 = vcombine.high %v839_v26, %v843_v27  ;;  %v891_v17 = vld [vmem:[#allocation6 + $0x4f8] sm:$0xff] }
 0x26d   :  { %2495 = vmatpush1.bf16.msra.mxu1 %v2809_v41  ;;  %v2865_v41 = vcombine.low %v838_v22, %v842_v25  ;;  %v898_v22 = vld [vmem:[#allocation6 + $0x530] sm:$0xff]  ;;  %v895_v25 = vld [vmem:[#allocation6 + $0x518] sm:$0xff] }
 0x26e   :  { %2581 = vmatpush1.bf16.msra.mxu0 %v2811_v42  ;;  %2496 = vmatprep.subr.bf16.mxu1 %v2818_v43  ;;  %v2867_v42 = vcombine.low %v839_v26, %v843_v27  ;;  %v2874_v43 = vcombine.high %v846_v37, %v850_v38  ;;  %v899_v26 = vld [vmem:[#allocation6 + $0x538] sm:$0xff]  ;;  %v2915_v27 = vcombine.low %v887_v16, %v891_v17 }
 0x26f   :  { %2582 = vmatprep.subr.bf16.mxu0 %v2820_v44  ;;  %v2876_v44 = vcombine.high %v847_v39, %v851_v40 }
 0x271   :  { %2497 = vmatpush1.bf16.msra.mxu1 %v2817_v49  ;;  %v2873_v49 = vcombine.low %v846_v37, %v850_v38  ;;  %v903_v37 = vld [vmem:[#allocation6 + $0x558] sm:$0xff] }
 0x272   :  { %2583 = vmatpush1.bf16.msra.mxu0 %v2819_v50  ;;  %2498 = vmatprep.subr.bf16.mxu1 %v2826_v51  ;;  %v2875_v50 = vcombine.low %v847_v39, %v851_v40  ;;  %v2882_v51 = vcombine.high %v854_v45, %v858_v46  ;;  %v907_v38 = vld [vmem:[#allocation6 + $0x578] sm:$0xff]  ;;  %v2923_v40 = vcombine.low %v895_v25, %v899_v26 }
 0x273   :  { %2584 = vmatprep.subr.bf16.mxu0 %v2828_v52  ;;  %v2884_v52 = vcombine.high %v855_v47, %v859_v48 }
 0x275   :  { %2499 = vmatpush1.bf16.msra.mxu1 %v2825_v59  ;;  %v2881_v59 = vcombine.low %v854_v45, %v858_v46  ;;  %v911_v45 = vld [vmem:[#allocation6 + $0x598] sm:$0xff] }
 0x276   :  { %2585 = vmatpush1.bf16.msra.mxu0 %v2827_v60  ;;  %2500 = vmatprep.subr.bf16.mxu1 %v2834_v61  ;;  %v2883_v60 = vcombine.low %v855_v47, %v859_v48  ;;  %v2890_v61 = vcombine.high %v862_v53, %v866_v54  ;;  %v915_v46 = vld [vmem:[#allocation6 + $0x5b8] sm:$0xff]  ;;  %v2931_v48 = vcombine.low %v903_v37, %v907_v38 }
 0x277   :  { %2586 = vmatprep.subr.bf16.mxu0 %v2836_v62  ;;  %v2892_v62 = vcombine.high %v863_v56, %v867_v58  ;;  %v919_v53 = vld [vmem:[#allocation6 + $0x5d8] sm:$0xff] }
 0x278   :  { %v923_v54 = vld [vmem:[#allocation6 + $0x5f8] sm:$0xff] }
 0x279   :  { %2501 = vmatpush1.bf16.msra.mxu1 %v2833_v3  ;;  %v875_v3 = vld [vmem:[#allocation6 + $0x478] sm:$0xff] }
 0x27a   :  { %2587 = vmatpush1.bf16.msra.mxu0 %v2835_v4  ;;  %2502 = vmatprep.subr.bf16.mxu1 %v2842_v5  ;;  %v2891_v4 = vcombine.low %v863_v56, %v867_v58  ;;  %v2898_v5 = vcombine.high %v870_v63, %v874_v0  ;;  %v2900_v8 = vcombine.high %v871_v2, %v875_v3 }
 0x27b   :  { %2588 = vmatprep.subr.bf16.mxu0 %v2844_v6  ;;  %v878_v6 = vld [vmem:[#allocation6 + $0x490] sm:$0xff]  ;;  %v2939_v58 = vcombine.low %v911_v45, %v915_v46 }
 0x27d   :  { %2503 = vmatpush1.bf16.msra.mxu1 %v2841_v10  ;;  %v2897_v10 = vcombine.low %v870_v63, %v874_v0  ;;  %v927_v63 = vld [vmem:[#allocation6 + $0x618] sm:$0xff] }
 0x27e   :  { %2589 = vmatpush1.bf16.msra.mxu0 %v2843_v11  ;;  %2504 = vmatprep.subr.bf16.mxu1 %v2850_v12  ;;  %v2899_v11 = vcombine.low %v871_v2, %v875_v3  ;;  %v2906_v12 = vcombine.high %v878_v6, %v882_v7  ;;  %v931_v0 = vld [vmem:[#allocation6 + $0x638] sm:$0xff]  ;;  %v2947_v2 = vcombine.low %v919_v53, %v923_v54 }
 0x27f   :  { %2590 = vmatprep.subr.bf16.mxu0 %v2852_v13  ;;  %v2908_v13 = vcombine.high %v879_v28, %v883_v9 }
 0x281   :  { %2505 = vmatpush1.bf16.msra.mxu1 %v2849_v18  ;;  %v2905_v18 = vcombine.low %v878_v6, %v882_v7  ;;  %v938_v6 = vld [vmem:[#allocation6 + $0x670] sm:$0xff]  ;;  %v935_v7 = vld [vmem:[#allocation6 + $0x658] sm:$0xff] }
 0x282   :  { %2591 = vmatpush1.bf16.msra.mxu0 %v2851_v19  ;;  %2506 = vmatprep.subr.bf16.mxu1 %v2858_v20  ;;  %v2914_v19 = vcombine.high %v886_v14, %v890_v15  ;;  %v2916_v20 = vcombine.high %v887_v16, %v891_v17 }
 0x283   :  { %2592 = vmatprep.subr.bf16.mxu0 %v2860_v21  ;;  %v894_v21 = vld [vmem:[#allocation6 + $0x510] sm:$0xff] }
 0x284   :  { %v2921_v39 = vcombine.low %v894_v21, %v898_v22 }
 0x285   :  { %2507 = vmatpush1.bf16.msra.mxu1 %v2857_v33  ;;  %v2922_v33 = vcombine.high %v894_v21, %v898_v22  ;;  %v951_v21 = vld [vmem:[#allocation6 + $0x6d8] sm:$0xff] }
 0x286   :  { %2593 = vmatpush1.bf16.msra.mxu0 %v2859_v34  ;;  %2508 = vmatprep.subr.bf16.mxu1 %v2866_v35  ;;  %v2924_v34 = vcombine.high %v895_v25, %v899_v26  ;;  %v902_v35 = vld [vmem:[#allocation6 + $0x550] sm:$0xff]  ;;  %v955_v22 = vld [vmem:[#allocation6 + $0x6f8] sm:$0xff] }
 0x287   :  { %2594 = vmatprep.subr.bf16.mxu0 %v2868_v36  ;;  %v906_v36 = vld [vmem:[#allocation6 + $0x570] sm:$0xff] }
 0x288   :  { %v2929_v47 = vcombine.low %v902_v35, %v906_v36 }
 0x289   :  { %2509 = vmatpush1.bf16.msra.mxu1 %v2865_v41  ;;  %v2930_v41 = vcombine.high %v902_v35, %v906_v36  ;;  %v959_v35 = vld [vmem:[#allocation6 + $0x718] sm:$0xff] }
 0x28a   :  { %2595 = vmatpush1.bf16.msra.mxu0 %v2867_v42  ;;  %2510 = vmatprep.subr.bf16.mxu1 %v2874_v43  ;;  %v2932_v42 = vcombine.high %v903_v37, %v907_v38  ;;  %v910_v43 = vld [vmem:[#allocation6 + $0x590] sm:$0xff]  ;;  %v963_v36 = vld [vmem:[#allocation6 + $0x738] sm:$0xff]  ;;  %v2979_v38 = vcombine.low %v951_v21, %v955_v22 }
 0x28b   :  { %2596 = vmatprep.subr.bf16.mxu0 %v2876_v44  ;;  %v914_v44 = vld [vmem:[#allocation6 + $0x5b0] sm:$0xff] }
 0x28c   :  { %v2937_v56 = vcombine.low %v910_v43, %v914_v44 }
 0x28d   :  { %2511 = vmatpush1.bf16.msra.mxu1 %v2873_v49  ;;  %v2938_v49 = vcombine.high %v910_v43, %v914_v44  ;;  %v967_v43 = vld [vmem:[#allocation6 + $0x758] sm:$0xff] }
 0x28e   :  { %2597 = vmatpush1.bf16.msra.mxu0 %v2875_v50  ;;  %2512 = vmatprep.subr.bf16.mxu1 %v2882_v51  ;;  %v2940_v50 = vcombine.high %v911_v45, %v915_v46  ;;  %v918_v51 = vld [vmem:[#allocation6 + $0x5d0] sm:$0xff]  ;;  %v971_v44 = vld [vmem:[#allocation6 + $0x778] sm:$0xff]  ;;  %v2987_v46 = vcombine.low %v959_v35, %v963_v36 }
 0x28f   :  { %2598 = vmatprep.subr.bf16.mxu0 %v2884_v52  ;;  %v922_v52 = vld [vmem:[#allocation6 + $0x5f0] sm:$0xff] }
 0x291   :  { %2513 = vmatpush1.bf16.msra.mxu1 %v2881_v59  ;;  %v2946_v59 = vcombine.high %v918_v51, %v922_v52 }
 0x292   :  { %2599 = vmatpush1.bf16.msra.mxu0 %v2883_v60  ;;  %2525 = vmatprep.subr.bf16.mxu1 %v2890_v61  ;;  %v2948_v60 = vcombine.high %v919_v53, %v923_v54  ;;  %v926_v61 = vld [vmem:[#allocation6 + $0x610] sm:$0xff]  ;;  %v2995_v54 = vcombine.low %v967_v43, %v971_v44 }
 0x293   :  { %2611 = vmatprep.subr.bf16.mxu0 %v2892_v62  ;;  %v930_v62 = vld [vmem:[#allocation6 + $0x630] sm:$0xff] }
 0x294   :  { %2515 = vmatmul.mubr.bf16.vlgmr.msra.gmra.mrb[8].mxu1 %v3361_v23  ;;  %v2954_v3 = vcombine.high %v926_v61, %v930_v62 }
 0x295   :  { %2601 = vmatmul.mubr.bf16.vlgmr.msra.gmra.mrb[12].mxu0 %v3361_v23  ;;  %2526 = vmatpush1.bf16.msra.mxu1 %v2889_v1  ;;  %v2907_v23 = vcombine.low %v879_v28, %v883_v9  ;;  %v2945_v1 = vcombine.low %v918_v51, %v922_v52  ;;  %v2953_v28 = vcombine.low %v926_v61, %v930_v62  ;;  %v975_v51 = vld [vmem:[#allocation6 + $0x798] sm:$0xff] }
 0x296   :  { %2557 = vmatprep.mubr.bf16.mxu1 %v3367_v31  ;;  %2612 = vmatpush1.bf16.msra.mxu0 %v2891_v4  ;;  %v2956_v4 = vcombine.high %v927_v63, %v931_v0  ;;  %v2955_v9 = vcombine.low %v927_v63, %v931_v0  ;;  %v979_v52 = vld [vmem:[#allocation6 + $0x7b8] sm:$0xff] }
 0x297   :  { %2643 = vmatprep.mubr.bf16.mxu0 %v3367_v31  ;;  %2527 = vmatprep.subr.bf16.mxu1 %v2898_v5  ;;  %v2913_v31 = vcombine.low %v886_v14, %v890_v15  ;;  %v934_v5 = vld [vmem:[#allocation6 + $0x650] sm:$0xff]  ;;  %v943_v14 = vld [vmem:[#allocation6 + $0x698] sm:$0xff]  ;;  %v3003_v0 = vcombine.low %v975_v51, %v979_v52 }
 0x298   :  { %2613 = vmatprep.subr.bf16.mxu0 %v2900_v8  ;;  %v939_v8 = vld [vmem:[#allocation6 + $0x678] sm:$0xff]  ;;  %v2961_v16 = vcombine.low %v934_v5, %v938_v6 }
 0x299   :  { %2528 = vmatpush1.bf16.msra.mxu1 %v2897_v10  ;;  %v2962_v10 = vcombine.high %v934_v5, %v938_v6  ;;  %v947_v15 = vld [vmem:[#allocation6 + $0x6b8] sm:$0xff]  ;;  %v2963_v17 = vcombine.low %v935_v7, %v939_v8  ;;  %v988_v5 = vld [vmem:[%s3454_s6] sm:$0xff] }
 0x29a   :  { %2614 = vmatpush1.bf16.msra.mxu0 %v2899_v11  ;;  %2529 = vmatprep.subr.bf16.mxu1 %v2906_v12  ;;  %v2964_v11 = vcombine.high %v935_v7, %v939_v8  ;;  %v942_v12 = vld [vmem:[#allocation6 + $0x690] sm:$0xff]  ;;  %v2971_v26 = vcombine.low %v943_v14, %v947_v15  ;;  %v983_v61 = vld [vmem:[#allocation6 + $0x7d8] sm:$0xff]  ;;  %v993_v6 = vrot.slane %v988_v5, %v3340_v30 }
 0x29b   :  { %2615 = vmatprep.subr.bf16.mxu0 %v2908_v13  ;;  %v946_v13 = vld [vmem:[#allocation6 + $0x6b0] sm:$0xff]  ;;  %v987_v62 = vld [vmem:[#allocation6 + $0x7f8] sm:$0xff]  ;;  %v1001_v7 = vrot.slane %v988_v5, %v304_v55  ;;  %v997_v8 = vrot.slane %v988_v5, %v3346_v32 }
 0x29c   :  { %v2969_v25 = vcombine.low %v942_v12, %v946_v13 }
 0x29d   :  { %2530 = vmatpush1.bf16.msra.mxu1 %v2905_v18  ;;  %v2970_v18 = vcombine.high %v942_v12, %v946_v13 }
 0x29e   :  { %2616 = vmatpush1.bf16.msra.mxu0 %v2907_v23  ;;  %2531 = vmatprep.subr.bf16.mxu1 %v2914_v19  ;;  %v2972_v23 = vcombine.high %v943_v14, %v947_v15  ;;  %v950_v19 = vld [vmem:[#allocation6 + $0x6d0] sm:$0xff] }
 0x29f   :  { %2617 = vmatprep.subr.bf16.mxu0 %v2916_v20  ;;  %v954_v20 = vld [vmem:[#allocation6 + $0x6f0] sm:$0xff] }
 0x2a0   :  { %v2977_v37 = vcombine.low %v950_v19, %v954_v20 }
 0x2a1   :  { %2532 = vmatpush1.bf16.msra.mxu1 %v2913_v31  ;;  %v2978_v31 = vcombine.high %v950_v19, %v954_v20  ;;  %v1008_v19 = vsub.s32 4, %v3337_v29  ;;  %v1016_v20 = vsub.s32 6, %v3337_v29 }
 0x2a2   :  { %2618 = vmatpush1.bf16.msra.mxu0 %v2915_v27  ;;  %2533 = vmatprep.subr.bf16.mxu1 %v2922_v33  ;;  %v2980_v27 = vcombine.high %v951_v21, %v955_v22  ;;  %v958_v33 = vld [vmem:[#allocation6 + $0x710] sm:$0xff]  ;;  %v1012_v21 = vsub.s32 5, %v3337_v29  ;;  %v1020_v22 = vsub.s32 7, %v3337_v29 }
 0x2a3   :  { %2619 = vmatprep.subr.bf16.mxu0 %v2924_v34  ;;  %v962_v34 = vld [vmem:[#allocation6 + $0x730] sm:$0xff] }
 0x2a4   :  { %v2985_v45 = vcombine.low %v958_v33, %v962_v34 }
 0x2a5   :  { %2534 = vmatpush1.bf16.msra.mxu1 %v2921_v39  ;;  %v2986_v39 = vcombine.high %v958_v33, %v962_v34 }
 0x2a6   :  { %2620 = vmatpush1.bf16.msra.mxu0 %v2923_v40  ;;  %2535 = vmatprep.subr.bf16.mxu1 %v2930_v41  ;;  %v2988_v40 = vcombine.high %v959_v35, %v963_v36  ;;  %v966_v41 = vld [vmem:[#allocation6 + $0x750] sm:$0xff] }
 0x2a7   :  { %2621 = vmatprep.subr.bf16.mxu0 %v2932_v42  ;;  %v970_v42 = vld [vmem:[#allocation6 + $0x770] sm:$0xff] }
 0x2a8   :  { %v2993_v53 = vcombine.low %v966_v41, %v970_v42 }
 0x2a9   :  { %2536 = vmatpush1.bf16.msra.mxu1 %v2929_v47  ;;  %v2994_v47 = vcombine.high %v966_v41, %v970_v42 }
 0x2aa   :  { %2622 = vmatpush1.bf16.msra.mxu0 %v2931_v48  ;;  %2537 = vmatprep.subr.bf16.mxu1 %v2938_v49  ;;  %v2996_v48 = vcombine.high %v967_v43, %v971_v44  ;;  %v974_v49 = vld [vmem:[#allocation6 + $0x790] sm:$0xff] }
 0x2ab   :  { %2623 = vmatprep.subr.bf16.mxu0 %v2940_v50  ;;  %v978_v50 = vld [vmem:[#allocation6 + $0x7b0] sm:$0xff] }
 0x2ac   :  { %v3001_v63 = vcombine.low %v974_v49, %v978_v50 }
 0x2ad   :  { %2538 = vmatpush1.bf16.msra.mxu1 %v2937_v56  ;;  %v3002_v56 = vcombine.high %v974_v49, %v978_v50 }
 0x2ae   :  { %2624 = vmatpush1.bf16.msra.mxu0 %v2939_v58  ;;  %2539 = vmatprep.subr.bf16.mxu1 %v2946_v59  ;;  %v3004_v58 = vcombine.high %v975_v51, %v979_v52  ;;  %v982_v59 = vld [vmem:[#allocation6 + $0x7d0] sm:$0xff] }
 0x2af   :  { %2625 = vmatprep.subr.bf16.mxu0 %v2948_v60  ;;  %v986_v60 = vld [vmem:[#allocation6 + $0x7f0] sm:$0xff] }
 0x2b1   :  { %2540 = vmatpush1.bf16.msra.mxu1 %v2945_v1  ;;  %v3010_v1 = vcombine.high %v982_v59, %v986_v60 }
 0x2b2   :  { %2626 = vmatpush1.bf16.msra.mxu0 %v2947_v2  ;;  %2541 = vmatprep.subr.bf16.mxu1 %v2954_v3  ;;  %v3012_v2 = vcombine.high %v983_v61, %v987_v62  ;;  %v3009_v3 = vcombine.low %v982_v59, %v986_v60 }
 0x2b3   :  { %2627 = vmatprep.subr.bf16.mxu0 %v2956_v4  ;;  %v3011_v4 = vcombine.low %v983_v61, %v987_v62 }
 0x2b5   :  { %2542 = vmatpush1.bf16.msra.mxu1 %v2953_v28  ;;  %v1005_v28 = vrot.slane %v988_v5, %v308_v57 }
 0x2b6   :  { %2628 = vmatpush1.bf16.msra.mxu0 %v2955_v9  ;;  %2543 = vmatprep.subr.bf16.mxu1 %v2962_v10 }
 0x2b7   :  { %2629 = vmatprep.subr.bf16.mxu0 %v2964_v11 }
 0x2b9   :  { %2544 = vmatpush1.bf16.msra.mxu1 %v2961_v16 }
 0x2ba   :  { %2630 = vmatpush1.bf16.msra.mxu0 %v2963_v17  ;;  %2545 = vmatprep.subr.bf16.mxu1 %v2970_v18 }
 0x2bb   :  { %2631 = vmatprep.subr.bf16.mxu0 %v2972_v23 }
 0x2bd   :  { %2546 = vmatpush1.bf16.msra.mxu1 %v2969_v25  ;;  %v1009_v25 = vrot.slane %v988_v5, %v1008_v19 }
 0x2be   :  { %2632 = vmatpush1.bf16.msra.mxu0 %v2971_v26  ;;  %2547 = vmatprep.subr.bf16.mxu1 %v2978_v31  ;;  %v1017_v26 = vrot.slane %v988_v5, %v1016_v20  ;;  %v1013_v31 = vrot.slane %v988_v5, %v1012_v21 }
 0x2bf   :  { %2633 = vmatprep.subr.bf16.mxu0 %v2980_v27  ;;  %v1021_v27 = vrot.slane %v988_v5, %v1020_v22 }
 0x2c1   :  { %2548 = vmatpush1.bf16.msra.mxu1 %v2977_v37 }
 0x2c2   :  { %2634 = vmatpush1.bf16.msra.mxu0 %v2979_v38  ;;  %2549 = vmatprep.subr.bf16.mxu1 %v2986_v39 }
 0x2c3   :  { %2635 = vmatprep.subr.bf16.mxu0 %v2988_v40 }
 0x2c5   :  { %2550 = vmatpush1.bf16.msra.mxu1 %v2985_v45 }
 0x2c6   :  { %2636 = vmatpush1.bf16.msra.mxu0 %v2987_v46  ;;  %2551 = vmatprep.subr.bf16.mxu1 %v2994_v47 }
 0x2c7   :  { %2637 = vmatprep.subr.bf16.mxu0 %v2996_v48 }
 0x2c9   :  { %2552 = vmatpush1.bf16.msra.mxu1 %v2993_v53 }
 0x2ca   :  { %2638 = vmatpush1.bf16.msra.mxu0 %v2995_v54  ;;  %2553 = vmatprep.subr.bf16.mxu1 %v3002_v56 }
 0x2cb   :  { %2639 = vmatprep.subr.bf16.mxu0 %v3004_v58 }
 0x2cd   :  { %2554 = vmatpush1.bf16.msra.mxu1 %v3001_v63 }
 0x2ce   :  { %2640 = vmatpush1.bf16.msra.mxu0 %v3003_v0  ;;  %2555 = vmatprep.subr.bf16.mxu1 %v3010_v1 }
 0x2cf   :  { %2641 = vmatprep.subr.bf16.mxu0 %v3012_v2 }
 0x2d1   :  { %2556 = vmatpush1.bf16.msra.mxu1 %v3009_v3 }
 0x2d2   :  { %2642 = vmatpush1.bf16.msra.mxu0 %v3011_v4 }
 0x2d4   :  { %2558 = vmatmul.mubr.bf16.vlgmr.msra.gmra.mrb[8].mxu1 %v3363_v24 }
 0x2d5   :  { %2644 = vmatmul.mubr.bf16.vlgmr.msra.gmra.mrb[12].mxu0 %v3363_v24 }
 0x327   :  { %v2387_v9 = vpop.f32.mrb[4].mxu1  ;;  %v2473_v10 = vpop.f32.mrb[8].mxu0 }
 0x328   :  { %v3013_v11 = vadd.f32 %v2387_v9, %v993_v6  ;;  %v3017_v12 = vadd.f32 %v2473_v10, %v1001_v7  ;;  %v2389_v13 = vpop.f32.mrb[5].mxu1  ;;  %v2475_v24 = vpop.f32.mrb[9].mxu0 }
 0x329   :  { %v3014_v14 = vadd.f32 %v2389_v13, %v997_v8  ;;  %v3018_v15 = vadd.f32 %v2475_v24, %v1005_v28  ;;  %v2391_v16 = vpop.f32.mrb[6].mxu1  ;;  %v2477_v17 = vpop.f32.mrb[10].mxu0 }
 0x32a   :  { %2654 = vst [vmem:[%s3455_s7] sm:$0xff] %v3013_v11  ;;  %2656 = vst [vmem:[%s3455_s7 + $0x10] sm:$0xff] %v3017_v12  ;;  %v3015_v30 = vadd.f32 %v2391_v16, %v993_v6  ;;  %v3019_v32 = vadd.f32 %v2477_v17, %v1001_v7  ;;  %v2393_v55 = vpop.f32.mrb[7].mxu1  ;;  %v2479_v57 = vpop.f32.mrb[11].mxu0 }
 0x32b   :  { %2655 = vst [vmem:[%s3455_s7 + $0x8] sm:$0xff] %v3014_v14  ;;  %2657 = vst [vmem:[%s3455_s7 + $0x18] sm:$0xff] %v3018_v15  ;;  %v3016_v18 = vadd.f32 %v2393_v55, %v997_v8  ;;  %v3020_v23 = vadd.f32 %v2479_v57, %v1005_v28 }
 0x32c   :  { %2663 = vst [vmem:[%s3455_s7 + $0x40] sm:$0xff] %v3015_v30  ;;  %2665 = vst [vmem:[%s3455_s7 + $0x50] sm:$0xff] %v3019_v32 }
 0x32d   :  { %2664 = vst [vmem:[%s3455_s7 + $0x48] sm:$0xff] %v3016_v18  ;;  %2666 = vst [vmem:[%s3455_s7 + $0x58] sm:$0xff] %v3020_v23 }
 0x3a7   :  { %v2559_v33 = vpop.f32.mrb[8].mxu1 }
 0x3a8   :  { %v3021_v34 = vadd.f32 %v2559_v33, %v1009_v25  ;;  %v2645_v35 = vpop.f32.mrb[12].mxu0  ;;  %v2561_v36 = vpop.f32.mrb[9].mxu1 }
 0x3a9   :  { %v3025_v37 = vadd.f32 %v2645_v35, %v1017_v26  ;;  %v3022_v38 = vadd.f32 %v2561_v36, %v1013_v31  ;;  %v2647_v39 = vpop.f32.mrb[13].mxu0  ;;  %v2563_v40 = vpop.f32.mrb[10].mxu1 }
 0x3aa   :  { %2658 = vst [vmem:[%s3455_s7 + $0x20] sm:$0xff] %v3021_v34  ;;  %v3026_v41 = vadd.f32 %v2647_v39, %v1021_v27  ;;  %v3023_v42 = vadd.f32 %v2563_v40, %v1009_v25  ;;  %v2649_v29 = vpop.f32.mrb[14].mxu0  ;;  %v2565_v43 = vpop.f32.mrb[11].mxu1 }
 0x3ab   :  { %2660 = vst [vmem:[%s3455_s7 + $0x30] sm:$0xff] %v3025_v37  ;;  %2659 = vst [vmem:[%s3455_s7 + $0x28] sm:$0xff] %v3022_v38  ;;  %v3027_v44 = vadd.f32 %v2649_v29, %v1017_v26  ;;  %v3024_v45 = vadd.f32 %v2565_v43, %v1013_v31  ;;  %v2651_v46 = vpop.f32.mrb[15].mxu0 }
 0x3ac   :  { %2662 = vst.msk [vmem:[%s3455_s7 + $0x38] sm:$0xff] %vm2661_vm0, %v3026_v41  ;;  %2667 = vst [vmem:[%s3455_s7 + $0x60] sm:$0xff] %v3023_v42  ;;  %v3028_v47 = vadd.f32 %v2651_v46, %v1021_v27 }
 0x3ad   :  { %2669 = vst [vmem:[%s3455_s7 + $0x70] sm:$0xff] %v3027_v44  ;;  %2668 = vst [vmem:[%s3455_s7 + $0x68] sm:$0xff] %v3024_v45 }
 0x3ae   :  { %2670 = vst.msk [vmem:[%s3455_s7 + $0x78] sm:$0xff] %vm2661_vm0, %v3028_v47 }
 0x3af   :  { %2675 = vsyncpa [#allocation3], 1 }
 0x3b0   :  { %2676 = vsyncpa [#allocation5], 1 }

</bundles_post_ra>
